<compile_context>
chip_gen: v7x
topology: tpu7x:2x2x1
jax: 0.10.0
libtpu: 0.0.40
codegen_flags: <defaults>
</compile_context>

<pallas_src>
import functools
import math

import jax
import jax.numpy as jnp
from jax import lax
from jax.experimental import pallas as pl
from jax.experimental.pallas import tpu as pltpu


# ---------------------------------------------------------------------------
# Kernels
# ---------------------------------------------------------------------------
def _attn_single_pass_kernel(x_ref, y_ref, wq_ref, wk_ref, wv_ref, wo_ref,
                             bq_ref, bk_ref, bv_ref, bo_ref,
                             o_ref, *, scale_inv):
    """One grid step = one full batch element (S small enough for VMEM)."""
    x = x_ref[...]                                                    # (S, D) bf16
    y = y_ref[...]                                                    # (S, D) bf16

    # Projections (f32 accumulate); fold 1/sqrt(H) into Q so the (S, S) score
    # matrix is never rescaled.
    q = (jnp.dot(y, wq_ref[...], preferred_element_type=jnp.float32)
         + bq_ref[...]) * scale_inv                                    # (S, H)
    k = jnp.dot(x, wk_ref[...], preferred_element_type=jnp.float32) + bk_ref[...]
    v = jnp.dot(x, wv_ref[...], preferred_element_type=jnp.float32) + bv_ref[...]

    # Q K^T via dot_general contracting on H — no explicit transpose (no XLU).
    s = lax.dot_general(q.astype(jnp.bfloat16), k.astype(jnp.bfloat16),
                        dimension_numbers=(((1,), (1,)), ((), ())),
                        preferred_element_type=jnp.float32)            # (S, S)

    # Row softmax in f32.
    m = jnp.max(s, axis=-1, keepdims=True)
    p = jnp.exp(s - m)
    l = jnp.sum(p, axis=-1, keepdims=True)

    ctx = jnp.dot(p.astype(jnp.bfloat16), v.astype(jnp.bfloat16),
                  preferred_element_type=jnp.float32)                  # (S, H)
    ctx = ctx * pl.reciprocal(l, approx=True)                          # EUP slot

    out = jnp.dot(ctx.astype(jnp.bfloat16), wo_ref[...],
                  preferred_element_type=jnp.float32) + bo_ref[...]    # (S, D)
    o_ref[...] = out.astype(o_ref.dtype)


def _flash_attn_kernel(x_ref, y_ref, wq_ref, wk_ref, wv_ref, wo_ref,
                       bq_ref, bk_ref, bv_ref, bo_ref,
                       o_ref,
                       q_scr, m_scr, l_scr, acc_scr,
                       *, scale_inv):
    """One grid step = one (TQ, D) query tile vs one (TK, D) key/value tile."""
    ki = pl.program_id(2)

    @pl.when(ki == 0)
    def _init():
        # Project queries once per (batch, q-tile); pre-scale by 1/sqrt(H).
        q = jnp.dot(y_ref[...], wq_ref[...], preferred_element_type=jnp.float32)
        q = (q + bq_ref[...]) * scale_inv
        q_scr[...] = q.astype(jnp.bfloat16)
        m_scr[...] = jnp.full_like(m_scr, -jnp.inf)
        l_scr[...] = jnp.zeros_like(l_scr)
        acc_scr[...] = jnp.zeros_like(acc_scr)

    x = x_ref[...]                                                    # (TK, D) bf16
    k = jnp.dot(x, wk_ref[...], preferred_element_type=jnp.float32) + bk_ref[...]
    v = jnp.dot(x, wv_ref[...], preferred_element_type=jnp.float32) + bv_ref[...]

    s = lax.dot_general(q_scr[...], k.astype(jnp.bfloat16),
                        dimension_numbers=(((1,), (1,)), ((), ())),
                        preferred_element_type=jnp.float32)           # (TQ, TK)

    # Online softmax update (f32).
    m_prev = m_scr[...]
    m_new = jnp.maximum(m_prev, jnp.max(s, axis=-1, keepdims=True))
    alpha = jnp.exp(m_prev - m_new)
    p = jnp.exp(s - m_new)
    l_scr[...] = alpha * l_scr[...] + jnp.sum(p, axis=-1, keepdims=True)
    acc_scr[...] = alpha * acc_scr[...] + jnp.dot(
        p.astype(jnp.bfloat16), v.astype(jnp.bfloat16),
        preferred_element_type=jnp.float32)
    m_scr[...] = m_new

    @pl.when(ki == pl.num_programs(2) - 1)
    def _finalize():
        ctx = acc_scr[...] * pl.reciprocal(l_scr[...], approx=True)   # (TQ, H)
        out = jnp.dot(ctx.astype(jnp.bfloat16), wo_ref[...],
                      preferred_element_type=jnp.float32) + bo_ref[...]
        o_ref[...] = out.astype(o_ref.dtype)


# ---------------------------------------------------------------------------
# Wrapper
# ---------------------------------------------------------------------------
def self_attention(x, y, wq, wk, wv, wo, bq, bk, bv, bo, *,
                   hidden_dim, tq=256, tk=256, single_pass_max_seq=1024):
    """x, y: (B, S, D) float32.  Weights in torch nn.Linear (out, in) layout.

    S <= single_pass_max_seq -> single-pass kernel, grid (B,).
    Larger S -> flash kernel; tq/tk are query / key-value tile sizes
    (256 feeds the v6e/v7x 256x256 MXU; also fine on v5e).
    """
    assert x.shape == y.shape, "x and y must have the same shape"
    B, S, D = x.shape
    H = hidden_dim
    scale_inv = 1.0 / math.sqrt(float(hidden_dim))

    # bf16 MXU operands (halves HBM->VMEM bytes); biases / accumulation in f32.
    x_bf = x.astype(jnp.bfloat16)
    y_bf = y.astype(jnp.bfloat16)
    wq_t = jnp.transpose(wq).astype(jnp.bfloat16)   # (D, H)
    wk_t = jnp.transpose(wk).astype(jnp.bfloat16)   # (D, H)
    wv_t = jnp.transpose(wv).astype(jnp.bfloat16)   # (D, H)
    wo_t = jnp.transpose(wo).astype(jnp.bfloat16)   # (H, D)
    bq_r = bq.reshape(1, H).astype(jnp.float32)
    bk_r = bk.reshape(1, H).astype(jnp.float32)
    bv_r = bv.reshape(1, H).astype(jnp.float32)
    bo_r = bo.reshape(1, D).astype(jnp.float32)

    out_shape = jax.ShapeDtypeStruct((B, S, D), x.dtype)
    operands = (x_bf, y_bf, wq_t, wk_t, wv_t, wo_t, bq_r, bk_r, bv_r, bo_r)

    if S <= single_pass_max_seq:
        # ------- single-pass path: grid over batch only -------
        def const_spec(shape):
            return pl.BlockSpec(shape, lambda b: (0,) * len(shape))

        kernel = functools.partial(_attn_single_pass_kernel, scale_inv=scale_inv)
        return pl.pallas_call(
            kernel,
            out_shape=out_shape,
            grid_spec=pltpu.PrefetchScalarGridSpec(
                num_scalar_prefetch=0,
                grid=(B,),
                in_specs=[
                    pl.BlockSpec((None, S, D), lambda b: (b, 0, 0)),   # x -> K/V
                    pl.BlockSpec((None, S, D), lambda b: (b, 0, 0)),   # y -> Q
                    const_spec((D, H)), const_spec((D, H)),
                    const_spec((D, H)), const_spec((H, D)),
                    const_spec((1, H)), const_spec((1, H)),
                    const_spec((1, H)), const_spec((1, D)),
                ],
                out_specs=pl.BlockSpec((None, S, D), lambda b: (b, 0, 0)),
            ),
            compiler_params=pltpu.CompilerParams(
                dimension_semantics=("parallel",),      # batch shards over TCs
            ),
        )(*operands)

    # ------- flash path: grid (B, S//tq, S//tk), KV axis is the reduction -------
    tq = min(tq, S)
    tk = min(tk, S)
    assert S % tq == 0 and S % tk == 0, "seq_len must be divisible by tile sizes"

    def const_spec(shape):
        return pl.BlockSpec(shape, lambda b, qi, ki: (0,) * len(shape))

    kernel = functools.partial(_flash_attn_kernel, scale_inv=scale_inv)
    return pl.pallas_call(
        kernel,
        out_shape=out_shape,
        grid_spec=pltpu.PrefetchScalarGridSpec(
            num_scalar_prefetch=0,
            grid=(B, S // tq, S // tk),
            in_specs=[
                pl.BlockSpec((None, tk, D), lambda b, qi, ki: (b, ki, 0)),  # x
                pl.BlockSpec((None, tq, D), lambda b, qi, ki: (b, qi, 0)),  # y
                const_spec((D, H)), const_spec((D, H)),
                const_spec((D, H)), const_spec((H, D)),
                const_spec((1, H)), const_spec((1, H)),
                const_spec((1, H)), const_spec((1, D)),
            ],
            out_specs=pl.BlockSpec((None, tq, D), lambda b, qi, ki: (b, qi, 0)),
            scratch_shapes=[
                pltpu.VMEM((tq, H), jnp.bfloat16),   # scaled Q tile
                pltpu.VMEM((tq, 1), jnp.float32),    # running row max
                pltpu.VMEM((tq, 1), jnp.float32),    # running row sum
                pltpu.VMEM((tq, H), jnp.float32),    # output accumulator
            ],
        ),
        compiler_params=pltpu.CompilerParams(
            dimension_semantics=("parallel", "parallel", "arbitrary"),
        ),
    )(*operands)


# ---------------------------------------------------------------------------
# Reference + test
# ---------------------------------------------------------------------------
def _init_linear(kw, kb, out_features, in_features):
    # nn.Linear default init: U(-1/sqrt(in), 1/sqrt(in)) for weight and bias.
    bound = 1.0 / math.sqrt(in_features)
    w = jax.random.uniform(kw, (out_features, in_features),
                           minval=-bound, maxval=bound, dtype=jnp.float32)
    b = jax.random.uniform(kb, (out_features,),
                           minval=-bound, maxval=bound, dtype=jnp.float32)
    return w, b


def _reference(x, y, wq, bq, wk, bk, wv, bv, wo, bo, hidden_dim):
    # Pure-JAX f32 reference mirroring the PyTorch forward (weights (out, in)).
    q = jnp.einsum("bsd,hd->bsh", y, wq) + bq
    k = jnp.einsum("bsd,hd->bsh", x, wk) + bk
    v = jnp.einsum("bsd,hd->bsh", x, wv) + bv
    scores = jnp.einsum("bqh,bkh->bqk", q, k) / math.sqrt(float(hidden_dim))
    attn = jax.nn.softmax(scores, axis=-1)
    ctx = jnp.einsum("bqk,bkh->bqh", attn, v)
    return jnp.einsum("bqh,dh->bqd", ctx, wo) + bo


if __name__ == "__main__":
    # attention1 = SelfAttention(4, bias_bool=True): input_dim = 4 latent
    # channels, seq_len = latent H*W (16x16 here), hidden_dim = 32.
    B = 2
    C = 4            # input_dim
    HW = 16          # latent spatial side -> seq_len = 256
    S = HW * HW
    HIDDEN = 32

    key = jax.random.PRNGKey(0)
    kx, ky, kq, kk, kv, ko, kbq, kbk, kbv, kbo = jax.random.split(key, 10)

    x = jax.random.normal(kx, (B, S, C), dtype=jnp.float32)
    y = jax.random.normal(ky, (B, S, C), dtype=jnp.float32)

    wq, bq = _init_linear(kq, kbq, HIDDEN, C)   # query_matrix
    wk, bk = _init_linear(kk, kbk, HIDDEN, C)   # key_matrix
    wv, bv = _init_linear(kv, kbv, HIDDEN, C)   # value_matrix
    wo, bo = _init_linear(ko, kbo, C, HIDDEN)   # linear (hidden -> input_dim)

    ref = _reference(x, y, wq, bq, wk, bk, wv, bv, wo, bo, HIDDEN)

    # Path 1: single-pass kernel (the shape this module actually sees).
    out = self_attention(x, y, wq, wk, wv, wo, bq, bk, bv, bo, hidden_dim=HIDDEN)
    out = jax.block_until_ready(out)
    assert out.shape == (B, S, C)
    err1 = float(jnp.max(jnp.abs(out - ref)))
    # bf16 MXU operands + approx reciprocal -> loosen tolerance vs f32 reference.
    assert jnp.allclose(out, ref, atol=2e-2, rtol=2e-2), \
        f"single-pass mismatch vs reference (max abs err {err1})"

    # Path 2: force the flash-style tiled path to validate the long-sequence code.
    out_flash = self_attention(x, y, wq, wk, wv, wo, bq, bk, bv, bo,
                               hidden_dim=HIDDEN, tq=128, tk=128,
                               single_pass_max_seq=0)
    out_flash = jax.block_until_ready(out_flash)
    err2 = float(jnp.max(jnp.abs(out_flash - ref)))
    assert jnp.allclose(out_flash, ref, atol=2e-2, rtol=2e-2), \
        f"flash-path mismatch vs reference (max abs err {err2})"

    print("KERNEL_OK")
</pallas_src>

<mosaic_0001>
module attributes {stable_mosaic.version = 11 : i64} {
  func.func @_attn_single_pass_kernel(%arg0: i32, %arg1: memref<1x256x4xbf16, #tpu.memory_space<vmem>>, %arg2: memref<1x256x4xbf16, #tpu.memory_space<vmem>>, %arg3: memref<4x32xbf16, #tpu.memory_space<vmem>>, %arg4: memref<4x32xbf16, #tpu.memory_space<vmem>>, %arg5: memref<4x32xbf16, #tpu.memory_space<vmem>>, %arg6: memref<32x4xbf16, #tpu.memory_space<vmem>>, %arg7: memref<1x32xf32, #tpu.memory_space<vmem>>, %arg8: memref<1x32xf32, #tpu.memory_space<vmem>>, %arg9: memref<1x32xf32, #tpu.memory_space<vmem>>, %arg10: memref<1x4xf32, #tpu.memory_space<vmem>>, %arg11: memref<1x256x4xf32, #tpu.memory_space<vmem>>) attributes {dimension_semantics = [#tpu.dimension_semantics<parallel>], iteration_bounds = array<i64: 2>, scalar_prefetch = 0 : i64, scratch_operands = 0 : i64, tpu.core_type = #tpu.core_type<tc>, window_params = [{transform_indices = @transform_0, window_bounds = array<i64: 1, 256, 4>}, {transform_indices = @transform_1, window_bounds = array<i64: 1, 256, 4>}, {pipeline_mode = #tpu.pipeline_mode<synchronous>, transform_indices = @transform_2, window_bounds = array<i64: 4, 32>}, {pipeline_mode = #tpu.pipeline_mode<synchronous>, transform_indices = @transform_3, window_bounds = array<i64: 4, 32>}, {pipeline_mode = #tpu.pipeline_mode<synchronous>, transform_indices = @transform_4, window_bounds = array<i64: 4, 32>}, {pipeline_mode = #tpu.pipeline_mode<synchronous>, transform_indices = @transform_5, window_bounds = array<i64: 32, 4>}, {pipeline_mode = #tpu.pipeline_mode<synchronous>, transform_indices = @transform_6, window_bounds = array<i64: 1, 32>}, {pipeline_mode = #tpu.pipeline_mode<synchronous>, transform_indices = @transform_7, window_bounds = array<i64: 1, 32>}, {pipeline_mode = #tpu.pipeline_mode<synchronous>, transform_indices = @transform_8, window_bounds = array<i64: 1, 32>}, {pipeline_mode = #tpu.pipeline_mode<synchronous>, transform_indices = @transform_9, window_bounds = array<i64: 1, 4>}, {transform_indices = @transform_10, window_bounds = array<i64: 1, 256, 4>}]} {
    %c0 = arith.constant 0 : index
    %c0_0 = arith.constant 0 : index
    %c0_1 = arith.constant 0 : index
    %0 = vector.load %arg1[%c0, %c0_0, %c0_1] : memref<1x256x4xbf16, #tpu.memory_space<vmem>>, vector<1x256x4xbf16>
    %1 = vector.shape_cast %0 : vector<1x256x4xbf16> to vector<256x4xbf16>
    %c0_2 = arith.constant 0 : index
    %c0_3 = arith.constant 0 : index
    %c0_4 = arith.constant 0 : index
    %2 = vector.load %arg2[%c0_2, %c0_3, %c0_4] : memref<1x256x4xbf16, #tpu.memory_space<vmem>>, vector<1x256x4xbf16>
    %3 = vector.shape_cast %2 : vector<1x256x4xbf16> to vector<256x4xbf16>
    %c0_5 = arith.constant 0 : index
    %c0_6 = arith.constant 0 : index
    %4 = vector.load %arg3[%c0_5, %c0_6] : memref<4x32xbf16, #tpu.memory_space<vmem>>, vector<4x32xbf16>
    %cst = arith.constant dense<0.000000e+00> : vector<256x32xf32>
    %5 = tpu.matmul %3, %4, %cst {dimension_numbers = #tpu.dot_dimension_numbers<[1], [0], [0], [1], [0, 0, 1, 1], [], []>} : vector<256x4xbf16>, vector<4x32xbf16>, vector<256x32xf32> -> vector<256x32xf32>
    %c0_7 = arith.constant 0 : index
    %c0_8 = arith.constant 0 : index
    %6 = vector.load %arg7[%c0_7, %c0_8] : memref<1x32xf32, #tpu.memory_space<vmem>>, vector<1x32xf32>
    %7 = vector.broadcast %6 : vector<1x32xf32> to vector<256x32xf32>
    %8 = arith.addf %5, %7 : vector<256x32xf32>
    %cst_9 = arith.constant 0.176776692 : f32
    %9 = vector.broadcast %cst_9 : f32 to vector<256x32xf32>
    %10 = arith.mulf %8, %9 : vector<256x32xf32>
    %c0_10 = arith.constant 0 : index
    %c0_11 = arith.constant 0 : index
    %11 = vector.load %arg4[%c0_10, %c0_11] : memref<4x32xbf16, #tpu.memory_space<vmem>>, vector<4x32xbf16>
    %cst_12 = arith.constant dense<0.000000e+00> : vector<256x32xf32>
    %12 = tpu.matmul %1, %11, %cst_12 {dimension_numbers = #tpu.dot_dimension_numbers<[1], [0], [0], [1], [0, 0, 1, 1], [], []>} : vector<256x4xbf16>, vector<4x32xbf16>, vector<256x32xf32> -> vector<256x32xf32>
    %c0_13 = arith.constant 0 : index
    %c0_14 = arith.constant 0 : index
    %13 = vector.load %arg8[%c0_13, %c0_14] : memref<1x32xf32, #tpu.memory_space<vmem>>, vector<1x32xf32>
    %14 = vector.broadcast %13 : vector<1x32xf32> to vector<256x32xf32>
    %15 = arith.addf %12, %14 : vector<256x32xf32>
    %c0_15 = arith.constant 0 : index
    %c0_16 = arith.constant 0 : index
    %16 = vector.load %arg5[%c0_15, %c0_16] : memref<4x32xbf16, #tpu.memory_space<vmem>>, vector<4x32xbf16>
    %cst_17 = arith.constant dense<0.000000e+00> : vector<256x32xf32>
    %17 = tpu.matmul %1, %16, %cst_17 {dimension_numbers = #tpu.dot_dimension_numbers<[1], [0], [0], [1], [0, 0, 1, 1], [], []>} : vector<256x4xbf16>, vector<4x32xbf16>, vector<256x32xf32> -> vector<256x32xf32>
    %c0_18 = arith.constant 0 : index
    %c0_19 = arith.constant 0 : index
    %18 = vector.load %arg9[%c0_18, %c0_19] : memref<1x32xf32, #tpu.memory_space<vmem>>, vector<1x32xf32>
    %19 = vector.broadcast %18 : vector<1x32xf32> to vector<256x32xf32>
    %20 = arith.addf %17, %19 : vector<256x32xf32>
    %21 = arith.truncf %10 : vector<256x32xf32> to vector<256x32xbf16>
    %22 = arith.truncf %15 : vector<256x32xf32> to vector<256x32xbf16>
    %cst_20 = arith.constant dense<0.000000e+00> : vector<256x256xf32>
    %23 = tpu.matmul %21, %22, %cst_20 {dimension_numbers = #tpu.dot_dimension_numbers<[1], [1], [0], [0], [0, 0, 1, 0], [], []>} : vector<256x32xbf16>, vector<256x32xbf16>, vector<256x256xf32> -> vector<256x256xf32>
    %cst_21 = arith.constant dense<0xFF800000> : vector<256xf32>
    %24 = vector.multi_reduction <maximumf>, %23, %cst_21 [1] : vector<256x256xf32> to vector<256xf32>
    %25 = vector.shape_cast %24 : vector<256xf32> to vector<256x1xf32>
    %26 = vector.broadcast %25 : vector<256x1xf32> to vector<256x256xf32>
    %27 = arith.subf %23, %26 : vector<256x256xf32>
    %28 = math.exp %27 : vector<256x256xf32>
    %cst_22 = arith.constant dense<0.000000e+00> : vector<256xf32>
    %29 = vector.multi_reduction <add>, %28, %cst_22 [1] : vector<256x256xf32> to vector<256xf32>
    %30 = vector.shape_cast %29 : vector<256xf32> to vector<256x1xf32>
    %31 = arith.truncf %28 : vector<256x256xf32> to vector<256x256xbf16>
    %32 = arith.truncf %20 : vector<256x32xf32> to vector<256x32xbf16>
    %cst_23 = arith.constant dense<0.000000e+00> : vector<256x32xf32>
    %33 = tpu.matmul %31, %32, %cst_23 {dimension_numbers = #tpu.dot_dimension_numbers<[1], [0], [0], [1], [0, 0, 1, 1], [], []>} : vector<256x256xbf16>, vector<256x32xbf16>, vector<256x32xf32> -> vector<256x32xf32>
    %34 = tpu.reciprocal %30 {approx = true} : vector<256x1xf32> -> vector<256x1xf32>
    %35 = vector.broadcast %34 : vector<256x1xf32> to vector<256x32xf32>
    %36 = arith.mulf %33, %35 : vector<256x32xf32>
    %37 = arith.truncf %36 : vector<256x32xf32> to vector<256x32xbf16>
    %c0_24 = arith.constant 0 : index
    %c0_25 = arith.constant 0 : index
    %38 = vector.load %arg6[%c0_24, %c0_25] : memref<32x4xbf16, #tpu.memory_space<vmem>>, vector<32x4xbf16>
    %cst_26 = arith.constant dense<0.000000e+00> : vector<256x4xf32>
    %39 = tpu.matmul %37, %38, %cst_26 {dimension_numbers = #tpu.dot_dimension_numbers<[1], [0], [0], [1], [0, 0, 1, 1], [], []>} : vector<256x32xbf16>, vector<32x4xbf16>, vector<256x4xf32> -> vector<256x4xf32>
    %c0_27 = arith.constant 0 : index
    %c0_28 = arith.constant 0 : index
    %40 = vector.load %arg10[%c0_27, %c0_28] : memref<1x4xf32, #tpu.memory_space<vmem>>, vector<1x4xf32>
    %41 = vector.broadcast %40 : vector<1x4xf32> to vector<256x4xf32>
    %42 = arith.addf %39, %41 : vector<256x4xf32>
    %c0_29 = arith.constant 0 : index
    %c0_30 = arith.constant 0 : index
    %c0_31 = arith.constant 0 : index
    %43 = vector.load %arg11[%c0_29, %c0_30, %c0_31] : memref<1x256x4xf32, #tpu.memory_space<vmem>>, vector<1x256x4xf32>
    %44 = vector.shape_cast %43 : vector<1x256x4xf32> to vector<256x4xf32>
    %45 = vector.shape_cast %42 : vector<256x4xf32> to vector<1x256x4xf32>
    tpu.vector_store %arg11[%c0_29, %c0_30, %c0_31], %45 {strides = array<i32>} : memref<1x256x4xf32, #tpu.memory_space<vmem>>, vector<1x256x4xf32>,
    return
  }
  func.func @transform_0(%arg0: i32) -> (i32, i32, i32) {
    %c0_i32 = arith.constant 0 : i32
    %c0_i32_0 = arith.constant 0 : i32
    %c0_i32_1 = arith.constant 0 : i32
    return %arg0, %c0_i32, %c0_i32_0 : i32, i32, i32
  }
  func.func @transform_1(%arg0: i32) -> (i32, i32, i32) {
    %c0_i32 = arith.constant 0 : i32
    %c0_i32_0 = arith.constant 0 : i32
    %c0_i32_1 = arith.constant 0 : i32
    return %arg0, %c0_i32, %c0_i32_0 : i32, i32, i32
  }
  func.func @transform_2(%arg0: i32) -> (i32, i32) {
    %c0_i32 = arith.constant 0 : i32
    %c0_i32_0 = arith.constant 0 : i32
    %c0_i32_1 = arith.constant 0 : i32
    return %c0_i32, %c0_i32_0 : i32, i32
  }
  func.func @transform_3(%arg0: i32) -> (i32, i32) {
    %c0_i32 = arith.constant 0 : i32
    %c0_i32_0 = arith.constant 0 : i32
    %c0_i32_1 = arith.constant 0 : i32
    return %c0_i32, %c0_i32_0 : i32, i32
  }
  func.func @transform_4(%arg0: i32) -> (i32, i32) {
    %c0_i32 = arith.constant 0 : i32
    %c0_i32_0 = arith.constant 0 : i32
    %c0_i32_1 = arith.constant 0 : i32
    return %c0_i32, %c0_i32_0 : i32, i32
  }
  func.func @transform_5(%arg0: i32) -> (i32, i32) {
    %c0_i32 = arith.constant 0 : i32
    %c0_i32_0 = arith.constant 0 : i32
    %c0_i32_1 = arith.constant 0 : i32
    return %c0_i32, %c0_i32_0 : i32, i32
  }
  func.func @transform_6(%arg0: i32) -> (i32, i32) {
    %c0_i32 = arith.constant 0 : i32
    %c0_i32_0 = arith.constant 0 : i32
    %c0_i32_1 = arith.constant 0 : i32
    return %c0_i32, %c0_i32_0 : i32, i32
  }
  func.func @transform_7(%arg0: i32) -> (i32, i32) {
    %c0_i32 = arith.constant 0 : i32
    %c0_i32_0 = arith.constant 0 : i32
    %c0_i32_1 = arith.constant 0 : i32
    return %c0_i32, %c0_i32_0 : i32, i32
  }
  func.func @transform_8(%arg0: i32) -> (i32, i32) {
    %c0_i32 = arith.constant 0 : i32
    %c0_i32_0 = arith.constant 0 : i32
    %c0_i32_1 = arith.constant 0 : i32
    return %c0_i32, %c0_i32_0 : i32, i32
  }
  func.func @transform_9(%arg0: i32) -> (i32, i32) {
    %c0_i32 = arith.constant 0 : i32
    %c0_i32_0 = arith.constant 0 : i32
    %c0_i32_1 = arith.constant 0 : i32
    return %c0_i32, %c0_i32_0 : i32, i32
  }
  func.func @transform_10(%arg0: i32) -> (i32, i32, i32) {
    %c0_i32 = arith.constant 0 : i32
    %c0_i32_0 = arith.constant 0 : i32
    %c0_i32_1 = arith.constant 0 : i32
    return %arg0, %c0_i32, %c0_i32_0 : i32, i32, i32
  }
}

</mosaic_0001>

<bundles_post_ra>
// kernel: tpu_custom_call.1
= control target key start
LH: loop header
LB: loop body
LE: loop exit
PB: predicated region body
PF: predicated region fallthrough
CT: control target
= control target key end

     0   :  { %s3386_s13 = smov 0   ;;  %s4250_s0 = inlined_call_operand.vmem [shape: bf16[2,256,4], index: 0, kind: input, shape index: {}]   ;;  %s4251_s1 = inlined_call_operand.vmem [shape: bf16[2,256,4], index: 1, kind: input, shape index: {}]   ;;  %s4252_s2 = inlined_call_operand.vmem [shape: bf16[4,32], index: 2, kind: input, shape index: {}]   ;;  %s4253_s3 = inlined_call_operand.vmem [shape: bf16[4,32], index: 3, kind: input, shape index: {}]   ;;  %s4254_s4 = inlined_call_operand.vmem [shape: bf16[4,32], index: 4, kind: input, shape index: {}]   ;;  %s4255_s5 = inlined_call_operand.vmem [shape: bf16[32,4], index: 5, kind: input, shape index: {}]   ;;  %s4256_s6 = inlined_call_operand.vmem [shape: f32[1,32], index: 6, kind: input, shape index: {}]   ;;  %s4257_s7 = inlined_call_operand.vmem [shape: f32[1,32], index: 7, kind: input, shape index: {}]   ;;  %s4258_s8 = inlined_call_operand.vmem [shape: f32[1,32], index: 8, kind: input, shape index: {}]   ;;  %s4259_s9 = inlined_call_operand.vmem [shape: f32[1,4], index: 9, kind: input, shape index: {}]   ;;  %s4260_s10 = inlined_call_operand.vmem [shape: f32[2,256,4], index: 10, kind: output, shape index: {}]  }
   0x1 LB: > { %s2577_s14 = sadd.s32 4294967295, %s3329_s13   ;;  %p2581_p0 = scmp.ge.s32.totalorder %s3329_s13, 1  ;;  %s3329_s13 = sphi %s3386_s13, %s20_s13  }
   0x2   : > { %p322_p1 = scmp.lt.s32.totalorder %s3329_s13, 3 }
   0x4   : > { %p323_p2 = pnand %p2581_p0, %p322_p1 }
   0x6   : > { %326 = sbr.rel (%p323_p2) target bundleno = 1274 (0x4fa), region = 60 }
   0xd   : > { %vm582_vm0 = vcmask 1041408   ;;  %v779_v0 = vld [vmem:[%s4253_s3] sm:$0x3]  ;;  %p365_p3 = scmp.lt.s32.totalorder %s2577_s14, 1  ;;  %vm533_vm1 = vcmask 31744   ;;  %vm1283_vm2 = vcmask 261120  }
   0xe   : > { %3079 = vmatprep.subr.msk.bf16.mxu1 %vm582_vm0, %v779_v0  ;;  %v916_v1 = vsel %vm582_vm0, %v779_v0, 0  ;;  %v445_v2 = vld [vmem:[%s4252_s2] sm:$0x3] }
   0xf   : > { %2975 = vmatpush3.bf16.msra.mxu1 %v916_v1  ;;  %s4301_s14 = smov (!%p365_p3, %s2577_s14), 1  ;;  %3078 = vmatprep.subr.msk.bf16.mxu0 %vm582_vm0, %v445_v2  ;;  %v584_v3 = vsel %vm582_vm0, %v445_v2, 0  ;;  %v1079_v36 = vld [vmem:[%s4254_s4] sm:$0x3] }
  0x10   : > { %2941 = vmatpush3.bf16.msra.mxu0 %v584_v3  ;;  %s2708_s19 = sshll.u32 %s4301_s14, 7  ;;  %v1088_v37 = vsel %vm582_vm0, %v1079_v36, 0  ;;  %v3543_v39 = vld [vmem:[%s4257_s7] ss:$0 sm:$0xff]  ;;  %s2710_s20 = sshll.u32 %s4301_s14, 8 }
  0x11   : > { %s3410_s22 = scalar_lea.vmem %s4250_s0, %s2708_s19  ;;  %s3440_s25 = scalar_lea.vmem %s4251_s1, %s2708_s19  ;;  %3080 = vmatprep.subr.msk.bf16.mxu0 %vm582_vm0, %v1079_v36  ;;  %v3584_v59 = vld [vmem:[%s4256_s6] ss:$0 sm:$0xff] }
  0x12   : > { %v3413_v4 = vld [vmem:[%s3410_s22] sm:$0xff]   ;;  %v3416_v5 = vld [vmem:[%s3410_s22 + $0x8] sm:$0xff]   ;;  %v3421_v6 = vld [vmem:[%s3410_s22 + $0x10] sm:$0xff]  }
  0x13   : > { %2976 = vmatprep.mubr.msk.bf16.mxu1 %vm533_vm1, %v3413_v4  ;;  %v3428_v7 = vld [vmem:[%s3410_s22 + $0x18] sm:$0xff]   ;;  %v3431_v8 = vld [vmem:[%s3410_s22 + $0x20] sm:$0xff]   ;;  %v3443_v9 = vld [vmem:[%s3410_s22 + $0x28] sm:$0xff]  }
  0x14   : > { %2977 = vmatmul.mubr.msk.bf16.vlgmr.msra.gmra.mrb[0].mxu1 %vm533_vm1, %v3416_v5  ;;  %v3446_v10 = vld [vmem:[%s3410_s22 + $0x30] sm:$0xff]   ;;  %v3113_v11 = vld [vmem:[%s3440_s25] sm:$0xff]   ;;  %v3114_v12 = vld [vmem:[%s3440_s25 + $0x8] sm:$0xff]  }
  0x15   : > { %2980 = vmatprep.mubr.msk.bf16.mxu1 %vm533_vm1, %v3421_v6  ;;  %2942 = vmatprep.mubr.msk.bf16.mxu0 %vm533_vm1, %v3113_v11  ;;  %v3115_v13 = vld [vmem:[%s3440_s25 + $0x10] sm:$0xff]   ;;  %v3459_v14 = vld [vmem:[%s3410_s22 + $0x38] sm:$0xff]   ;;  %v3462_v15 = vld [vmem:[%s3410_s22 + $0x40] sm:$0xff]  }
  0x16   : > { %2943 = vmatmul.mubr.msk.bf16.vlgmr.msra.gmra.mrb[0].mxu0 %vm533_vm1, %v3114_v12  ;;  %v3116_v16 = vld [vmem:[%s3440_s25 + $0x18] sm:$0xff]   ;;  %v3117_v17 = vld [vmem:[%s3440_s25 + $0x20] sm:$0xff]   ;;  %v3473_v18 = vld [vmem:[%s3410_s22 + $0x48] sm:$0xff]  }
  0x17   : > { %2946 = vmatprep.mubr.msk.bf16.mxu0 %vm533_vm1, %v3115_v13  ;;  %v3118_v19 = vld [vmem:[%s3440_s25 + $0x28] sm:$0xff]   ;;  %v3477_v20 = vld [vmem:[%s3410_s22 + $0x50] sm:$0xff]   ;;  %v3487_v22 = vld [vmem:[%s3410_s22 + $0x58] sm:$0xff]   ;;  %3009 = vmatpush3.bf16.msra.mxu0 %v1088_v37 }
  0x18   : > { %v3119_v21 = vld [vmem:[%s3440_s25 + $0x30] sm:$0xff]   ;;  %v3120_v23 = vld [vmem:[%s3440_s25 + $0x38] sm:$0xff]   ;;  %v3491_v24 = vld [vmem:[%s3410_s22 + $0x60] sm:$0xff]  }
  0x19   : > { %v3121_v25 = vld [vmem:[%s3440_s25 + $0x40] sm:$0xff]   ;;  %v3501_v26 = vld [vmem:[%s3410_s22 + $0x68] sm:$0xff]   ;;  %v3505_v28 = vld [vmem:[%s3410_s22 + $0x70] sm:$0xff]  }
  0x1a   : > { %v3122_v27 = vld [vmem:[%s3440_s25 + $0x48] sm:$0xff]   ;;  %v3123_v29 = vld [vmem:[%s3440_s25 + $0x50] sm:$0xff]   ;;  %v3515_v30 = vld [vmem:[%s3410_s22 + $0x78] sm:$0xff]  }
  0x1b   : > { %v3124_v31 = vld [vmem:[%s3440_s25 + $0x58] sm:$0xff]   ;;  %v3125_v32 = vld [vmem:[%s3440_s25 + $0x60] sm:$0xff]   ;;  %v3126_v33 = vld [vmem:[%s3440_s25 + $0x68] sm:$0xff]  }
  0x1c   : > { %2981 = vmatmul.mubr.msk.bf16.gmra.mrb[4].mxu1 %vm533_vm1, %v3428_v7  ;;  %v3127_v34 = vld [vmem:[%s3440_s25 + $0x70] sm:$0xff]   ;;  %v3128_v35 = vld [vmem:[%s3440_s25 + $0x78] sm:$0xff]   ;;  %s4149_s25 = scalar_lea.vmem %s4260_s10, %s2710_s20 }
  0x1d   : > { %2984 = vmatprep.mubr.msk.bf16.mxu1 %vm533_vm1, %v3431_v8 }
  0x1e   : > { %2947 = vmatmul.mubr.msk.bf16.gmra.mrb[4].mxu0 %vm533_vm1, %v3116_v16 }
  0x1f   : > { %2950 = vmatprep.mubr.msk.bf16.mxu0 %vm533_vm1, %v3117_v17 }
  0x24   : > { %2985 = vmatmul.mubr.msk.bf16.gmra.mrb[8].mxu1 %vm533_vm1, %v3443_v9 }
  0x25   : > { %2988 = vmatprep.mubr.msk.bf16.mxu1 %vm533_vm1, %v3446_v10 }
  0x26   : > { %2951 = vmatmul.mubr.msk.bf16.gmra.mrb[8].mxu0 %vm533_vm1, %v3118_v19 }
  0x27   : > { %2954 = vmatprep.mubr.msk.bf16.mxu0 %vm533_vm1, %v3119_v21 }
  0x2c   : > { %2989 = vmatmul.mubr.msk.bf16.gmra.mrb[12].mxu1 %vm533_vm1, %v3459_v14 }
  0x2d   : > { %2992 = vmatprep.mubr.msk.bf16.mxu1 %vm533_vm1, %v3462_v15 }
  0x2e   : > { %2955 = vmatmul.mubr.msk.bf16.gmra.mrb[12].mxu0 %vm533_vm1, %v3120_v23 }
  0x2f   : > { %2958 = vmatprep.mubr.msk.bf16.mxu0 %vm533_vm1, %v3121_v25 }
  0x34   : > { %2993 = vmatmul.mubr.msk.bf16.gmra.mrb[16].mxu1 %vm533_vm1, %v3473_v18 }
  0x35   : > { %2996 = vmatprep.mubr.msk.bf16.mxu1 %vm533_vm1, %v3477_v20 }
  0x36   : > { %2959 = vmatmul.mubr.msk.bf16.gmra.mrb[16].mxu0 %vm533_vm1, %v3122_v27 }
  0x37   : > { %2962 = vmatprep.mubr.msk.bf16.mxu0 %vm533_vm1, %v3123_v29 }
  0x3c   : > { %2997 = vmatmul.mubr.msk.bf16.gmra.mrb[20].mxu1 %vm533_vm1, %v3487_v22 }
  0x3d   : > { %3000 = vmatprep.mubr.msk.bf16.mxu1 %vm533_vm1, %v3491_v24 }
  0x3e   : > { %2963 = vmatmul.mubr.msk.bf16.gmra.mrb[20].mxu0 %vm533_vm1, %v3124_v31 }
  0x3f   : > { %2966 = vmatprep.mubr.msk.bf16.mxu0 %vm533_vm1, %v3125_v32 }
  0x44   : > { %3001 = vmatmul.mubr.msk.bf16.gmra.mrb[24].mxu1 %vm533_vm1, %v3501_v26 }
  0x45   : > { %3004 = vmatprep.mubr.msk.bf16.mxu1 %vm533_vm1, %v3505_v28 }
  0x46   : > { %2967 = vmatmul.mubr.msk.bf16.gmra.mrb[24].mxu0 %vm533_vm1, %v3126_v33 }
  0x47   : > { %2970 = vmatprep.mubr.msk.bf16.mxu0 %vm533_vm1, %v3127_v34 }
  0x4c   : > { %3005 = vmatmul.mubr.msk.bf16.gmra.mrb[28].mxu1 %vm533_vm1, %v3515_v30 }
  0x4e   : > { %2971 = vmatmul.mubr.msk.bf16.gmra.mrb[28].mxu0 %vm533_vm1, %v3128_v35 }
  0x4f   : > { %3010 = vmatprep.mubr.msk.bf16.mxu0 %vm533_vm1, %v3413_v4 }
  0x56   : > { %3011 = vmatmul.mubr.msk.bf16.vlgmr.msra.gmra.mrb[32].mxu0 %vm533_vm1, %v3416_v5 }
  0x57   : > { %3014 = vmatprep.mubr.msk.bf16.mxu0 %vm533_vm1, %v3421_v6 }
  0x5e   : > { %3015 = vmatmul.mubr.msk.bf16.gmra.mrb[36].mxu0 %vm533_vm1, %v3428_v7 }
  0x5f   : > { %3018 = vmatprep.mubr.msk.bf16.mxu0 %vm533_vm1, %v3431_v8 }
  0x66   : > { %3019 = vmatmul.mubr.msk.bf16.gmra.mrb[40].mxu0 %vm533_vm1, %v3443_v9 }
  0x67   : > { %3022 = vmatprep.mubr.msk.bf16.mxu0 %vm533_vm1, %v3446_v10 }
  0x6e   : > { %3023 = vmatmul.mubr.msk.bf16.gmra.mrb[44].mxu0 %vm533_vm1, %v3459_v14 }
  0x6f   : > { %3026 = vmatprep.mubr.msk.bf16.mxu0 %vm533_vm1, %v3462_v15 }
  0x76   : > { %3027 = vmatmul.mubr.msk.bf16.gmra.mrb[48].mxu0 %vm533_vm1, %v3473_v18 }
  0x77   : > { %3030 = vmatprep.mubr.msk.bf16.mxu0 %vm533_vm1, %v3477_v20 }
  0x7e   : > { %3031 = vmatmul.mubr.msk.bf16.gmra.mrb[52].mxu0 %vm533_vm1, %v3487_v22 }
  0x7f   : > { %3034 = vmatprep.mubr.msk.bf16.mxu0 %vm533_vm1, %v3491_v24 }
  0x86   : > { %3035 = vmatmul.mubr.msk.bf16.gmra.mrb[56].mxu0 %vm533_vm1, %v3501_v26 }
  0x87   : > { %3038 = vmatprep.mubr.msk.bf16.mxu0 %vm533_vm1, %v3505_v28 }
  0x8e   : > { %3039 = vmatmul.mubr.msk.bf16.gmra.mrb[60].mxu0 %vm533_vm1, %v3515_v30 }
  0xe7   : > { %v2978_v38 = vpop.f32.mrb[0].mxu1 }
  0xe8   : > { %v952_v40 = vpop.f32.mrb[1].mxu1  ;;  %v3546_v42 = vadd.f32 %v2978_v38, %v3543_v39 }
  0xe9   : > { %v2979_v41 = vpop.f32.mrb[2].mxu1  ;;  %v3552_v45 = vadd.f32 %v3543_v39, %v952_v40  ;;  %v2944_v61 = vpop.f32.mrb[0].mxu0 }
  0xea   : > { %v3549_v43 = vadd.f32 %v2979_v41, %v3543_v39  ;;  %v955_v44 = vpop.f32.mrb[3].mxu1  ;;  %v629_v63 = vadd.f32 %v2944_v61, %v3584_v59  ;;  %v620_v0 = vpop.f32.mrb[1].mxu0 }
  0xeb   : > { %v3555_v46 = vadd.f32 %v3543_v39, %v955_v44  ;;  %v621_v2 = vadd.f32 %v3584_v59, %v620_v0  ;;  %v2945_v3 = vpop.f32.mrb[2].mxu0 }
  0xec   : > { %v1268_v47 = vpack.c.bf16 %v3549_v43, %v3546_v42  ;;  %v749_v7 = vmul.f32 0.17677669, %v629_v63  ;;  %v632_v8 = vadd.f32 %v2945_v3, %v3584_v59  ;;  %v623_v9 = vpop.f32.mrb[3].mxu0 }
  0xed   : > { %v1267_v48 = vpack.c.bf16 %v3555_v46, %v3552_v45  ;;  %v747_v12 = vmul.f32 0.17677669, %v621_v2  ;;  %v624_v13 = vadd.f32 %v3584_v59, %v623_v9 }
  0xee   : > { %v750_v17 = vmul.f32 0.17677669, %v632_v8 }
  0xef   : > { %v2982_v49 = vpop.f32.mrb[4].mxu1  ;;  %v748_v21 = vmul.f32 0.17677669, %v624_v13 }
  0xf0   : > { %v968_v50 = vpop.f32.mrb[5].mxu1  ;;  %v3566_v52 = vadd.f32 %v2982_v49, %v3543_v39  ;;  %v3612_v23 = vpack.c.bf16 %v750_v17, %v749_v7 }
  0xf1   : > { %v2983_v51 = vpop.f32.mrb[6].mxu1  ;;  %v3572_v55 = vadd.f32 %v3543_v39, %v968_v50  ;;  %v3616_v27 = vpack.c.bf16 %v748_v21, %v747_v12  ;;  %v2948_v29 = vpop.f32.mrb[4].mxu0 }
  0xf2   : > { %v3569_v53 = vadd.f32 %v2983_v51, %v3543_v39  ;;  %v971_v54 = vpop.f32.mrb[7].mxu1  ;;  %v645_v32 = vadd.f32 %v2948_v29, %v3584_v59  ;;  %v636_v33 = vpop.f32.mrb[5].mxu0 }
  0xf3   : > { %v3575_v56 = vadd.f32 %v3543_v39, %v971_v54  ;;  %2778 = vmatprep.mubr.msk.bf16.mxu1 %vm1283_vm2, %v3616_v27  ;;  %v637_v14 = vadd.f32 %v3584_v59, %v636_v33  ;;  %v2949_v35 = vpop.f32.mrb[6].mxu0 }
  0xf4   : > { %v1270_v57 = vpack.c.bf16 %v3569_v53, %v3566_v52  ;;  %v753_v38 = vmul.f32 0.17677669, %v645_v32  ;;  %v648_v40 = vadd.f32 %v2949_v35, %v3584_v59  ;;  %v639_v41 = vpop.f32.mrb[7].mxu0 }
  0xf5   : > { %v1269_v58 = vpack.c.bf16 %v3575_v56, %v3572_v55  ;;  %v751_v50 = vmul.f32 0.17677669, %v637_v14  ;;  %v640_v51 = vadd.f32 %v3584_v59, %v639_v41 }
  0xf7   : > { %v2986_v60 = vpop.f32.mrb[8].mxu1 }
  0xf8   : > { %v984_v62 = vpop.f32.mrb[9].mxu1  ;;  %v3593_v4 = vadd.f32 %v2986_v60, %v3543_v39  ;;  %v754_v60 = vmul.f32 0.17677669, %v648_v40  ;;  %v1333_v40 = vsel %vm1283_vm2, %v1267_v48, 0 }
  0xf9   : > { %v2987_v1 = vpop.f32.mrb[10].mxu1  ;;  %v3600_v10 = vadd.f32 %v3543_v39, %v984_v62  ;;  %v752_v62 = vmul.f32 0.17677669, %v640_v51  ;;  %v2952_v2 = vpop.f32.mrb[8].mxu0 }
  0xfa   : > { %v3596_v5 = vadd.f32 %v2987_v1, %v3543_v39  ;;  %v987_v6 = vpop.f32.mrb[11].mxu1  ;;  %v3642_v63 = vpack.c.bf16 %v754_v60, %v753_v38  ;;  %v652_v7 = vpop.f32.mrb[9].mxu0 }
  0xfb   : > { %v3603_v11 = vadd.f32 %v3543_v39, %v987_v6  ;;  %v3646_v1 = vpack.c.bf16 %v752_v62, %v751_v50  ;;  %v661_v6 = vadd.f32 %v2952_v2, %v3584_v59  ;;  %v653_v9 = vadd.f32 %v3584_v59, %v652_v7  ;;  %v2953_v12 = vpop.f32.mrb[10].mxu0 }
  0xfc   : > { %v1272_v16 = vpack.c.bf16 %v3596_v5, %v3593_v4  ;;  %v664_v20 = vadd.f32 %v2953_v12, %v3584_v59  ;;  %v3816_v5 = vld [vmem:[%s4258_s8] ss:$0 sm:$0xff] }
  0xfd   : > { %v1271_v19 = vpack.c.bf16 %v3603_v11, %v3600_v10  ;;  %v757_v21 = vmul.f32 0.17677669, %v661_v6  ;;  %v755_v32 = vmul.f32 0.17677669, %v653_v9 }
  0xfe   : > { %v758_v14 = vmul.f32 0.17677669, %v664_v20 }
  0xff   : > { %v2990_v25 = vpop.f32.mrb[12].mxu1 }
 0x100   : > { %v1000_v31 = vpop.f32.mrb[13].mxu1  ;;  %v3623_v36 = vadd.f32 %v2990_v25, %v3543_v39  ;;  %v655_v25 = vpop.f32.mrb[11].mxu0  ;;  %v3658_v38 = vpack.c.bf16 %v758_v14, %v757_v21 }
 0x101   : > { %v2991_v34 = vpop.f32.mrb[14].mxu1  ;;  %v3630_v44 = vadd.f32 %v3543_v39, %v1000_v31  ;;  %v656_v33 = vadd.f32 %v3584_v59, %v655_v25  ;;  %v2956_v51 = vpop.f32.mrb[12].mxu0 }
 0x102   : > { %v3626_v15 = vadd.f32 %v2991_v34, %v3543_v39  ;;  %v1003_v37 = vpop.f32.mrb[15].mxu1  ;;  %v677_v62 = vadd.f32 %v2956_v51, %v3584_v59 }
 0x103   : > { %v3633_v49 = vadd.f32 %v3543_v39, %v1003_v37  ;;  %v756_v37 = vmul.f32 0.17677669, %v656_v33 }
 0x104   : > { %v1274_v54 = vpack.c.bf16 %v3626_v15, %v3623_v36  ;;  %v761_v6 = vmul.f32 0.17677669, %v677_v62 }
 0x105   : > { %v1273_v61 = vpack.c.bf16 %v3633_v49, %v3630_v44  ;;  %v3667_v50 = vpack.c.bf16 %v756_v37, %v755_v32 }
 0x107   : > { %v2994_v0 = vpop.f32.mrb[16].mxu1 }
 0x108   : > { %v1016_v3 = vpop.f32.mrb[17].mxu1  ;;  %v1025_v13 = vadd.f32 %v2994_v0, %v3543_v39  ;;  %v668_v0 = vpop.f32.mrb[13].mxu0 }
 0x109   : > { %v2995_v8 = vpop.f32.mrb[18].mxu1  ;;  %v1017_v29 = vadd.f32 %v3543_v39, %v1016_v3  ;;  %v669_v45 = vadd.f32 %v3584_v59, %v668_v0  ;;  %v2957_v46 = vpop.f32.mrb[14].mxu0 }
 0x10a   : > { %v1028_v18 = vadd.f32 %v2995_v8, %v3543_v39  ;;  %v1019_v17 = vpop.f32.mrb[19].mxu1  ;;  %v680_v7 = vadd.f32 %v2957_v46, %v3584_v59  ;;  %v671_v8 = vpop.f32.mrb[15].mxu0 }
 0x10b   : > { %v1020_v31 = vadd.f32 %v3543_v39, %v1019_v17  ;;  %v759_v12 = vmul.f32 0.17677669, %v669_v45  ;;  %v2960_v33 = vpop.f32.mrb[16].mxu0 }
 0x10c   : > { %v1276_v34 = vpack.c.bf16 %v1028_v18, %v1025_v13  ;;  %v672_v13 = vadd.f32 %v3584_v59, %v671_v8  ;;  %v762_v17 = vmul.f32 0.17677669, %v680_v7  ;;  %v693_v26 = vadd.f32 %v2960_v33, %v3584_v59 }
 0x10d   : > { %v1275_v35 = vpack.c.bf16 %v1020_v31, %v1017_v29  ;;  %v1336_v29 = vsel %vm1283_vm2, %v1268_v47, 0 }
 0x10e   : > { %v760_v20 = vmul.f32 0.17677669, %v672_v13  ;;  %v3680_v25 = vpack.c.bf16 %v762_v17, %v761_v6 }
 0x10f   : > { %3081 = vmatprep.subr.msk.bf16.mxu1 %vm1283_vm2, %v1275_v35  ;;  %v2998_v41 = vpop.f32.mrb[20].mxu1  ;;  %v684_v35 = vpop.f32.mrb[17].mxu0 }
 0x110   : > { %2763 = vmatpush3.bf16.xpose.msra.mxu1 %v1333_v40  ;;  %v1041_v60 = vadd.f32 %v2998_v41, %v3543_v39  ;;  %v1032_v22 = vpop.f32.mrb[21].mxu1  ;;  %v3688_v32 = vpack.c.bf16 %v760_v20, %v759_v12  ;;  %v685_v42 = vadd.f32 %v3584_v59, %v684_v35  ;;  %v2961_v43 = vpop.f32.mrb[18].mxu0  ;;  %v765_v41 = vmul.f32 0.17677669, %v693_v26 }
 0x111   : > { %3082 = vmatprep.subr.msk.bf16.mxu1 %vm1283_vm2, %v1276_v34  ;;  %v1033_v24 = vadd.f32 %v3543_v39, %v1032_v22  ;;  %v2999_v2 = vpop.f32.mrb[22].mxu1  ;;  %v696_v51 = vadd.f32 %v2961_v43, %v3584_v59  ;;  %v1342_v43 = vsel %vm1283_vm2, %v1270_v57, 0 }
 0x112   : > { %v1044_v48 = vadd.f32 %v2999_v2, %v3543_v39  ;;  %v1035_v3 = vpop.f32.mrb[23].mxu1  ;;  %v763_v62 = vmul.f32 0.17677669, %v685_v42 }
 0x113   : > { %v1036_v9 = vadd.f32 %v3543_v39, %v1035_v3  ;;  %v766_v2 = vmul.f32 0.17677669, %v696_v51  ;;  %v1339_v3 = vsel %vm1283_vm2, %v1269_v58, 0 }
 0x114   : > { %v1278_v18 = vpack.c.bf16 %v1044_v48, %v1041_v60  ;;  %v687_v60 = vpop.f32.mrb[19].mxu0 }
 0x115   : > { %v1277_v21 = vpack.c.bf16 %v1036_v9, %v1033_v24  ;;  %v688_v0 = vadd.f32 %v3584_v59, %v687_v60  ;;  %v3707_v48 = vpack.c.bf16 %v766_v2, %v765_v41  ;;  %v2964_v8 = vpop.f32.mrb[20].mxu0 }
 0x116   : > { %v709_v13 = vadd.f32 %v2964_v8, %v3584_v59  ;;  %v700_v17 = vpop.f32.mrb[21].mxu0 }
 0x117   : > { %v3002_v31 = vpop.f32.mrb[24].mxu1  ;;  %v764_v46 = vmul.f32 0.17677669, %v688_v0  ;;  %v701_v55 = vadd.f32 %v3584_v59, %v700_v17  ;;  %v2965_v56 = vpop.f32.mrb[22].mxu0 }
 0x118   : > { %2765 = vmatpush3.bf16.xpose.msra.mxu1 %v1336_v29  ;;  %v3691_v34 = vadd.f32 %v3002_v31, %v3543_v39  ;;  %v1048_v14 = vpop.f32.mrb[25].mxu1  ;;  %v769_v29 = vmul.f32 0.17677669, %v709_v13  ;;  %v712_v31 = vadd.f32 %v2965_v56, %v3584_v59  ;;  %v703_v33 = vpop.f32.mrb[23].mxu0 }
 0x119   : > { %3083 = vmatprep.subr.msk.bf16.mxu1 %vm1283_vm2, %v1277_v21  ;;  %v1049_v28 = vadd.f32 %v3543_v39, %v1048_v14  ;;  %v3003_v37 = vpop.f32.mrb[26].mxu1  ;;  %v3713_v7 = vpack.c.bf16 %v764_v46, %v763_v62  ;;  %v767_v14 = vmul.f32 0.17677669, %v701_v55  ;;  %v704_v26 = vadd.f32 %v3584_v59, %v703_v33 }
 0x11a   : > { %v3698_v47 = vadd.f32 %v3003_v37, %v3543_v39  ;;  %v1051_v40 = vpop.f32.mrb[27].mxu1  ;;  %v770_v35 = vmul.f32 0.17677669, %v712_v31 }
 0x11b   : > { %v1052_v22 = vadd.f32 %v3543_v39, %v1051_v40  ;;  %v768_v37 = vmul.f32 0.17677669, %v704_v26  ;;  %v2968_v40 = vpop.f32.mrb[24].mxu0 }
 0x11c   : > { %v1280_v24 = vpack.c.bf16 %v3698_v47, %v3691_v34  ;;  %v3727_v42 = vpack.c.bf16 %v770_v35, %v769_v29  ;;  %v716_v41 = vpop.f32.mrb[25].mxu0 }
 0x11d   : > { %v1279_v45 = vpack.c.bf16 %v1052_v22, %v1049_v28  ;;  %v1261_v47 = vpack.c.bf16 %v768_v37, %v767_v14  ;;  %v717_v51 = vadd.f32 %v3584_v59, %v716_v41  ;;  %v2969_v60 = vpop.f32.mrb[26].mxu0 }
 0x11e   : > { %v728_v62 = vadd.f32 %v2969_v60, %v3584_v59  ;;  %v719_v0 = vpop.f32.mrb[27].mxu0 }
 0x11f   : > { %v3006_v6 = vpop.f32.mrb[28].mxu1  ;;  %v771_v2 = vmul.f32 0.17677669, %v717_v51  ;;  %v720_v52 = vadd.f32 %v3584_v59, %v719_v0 }
 0x120   : > { %2767 = vmatpush3.bf16.xpose.msra.mxu1 %v1339_v3  ;;  %v3716_v9 = vadd.f32 %v3006_v6, %v3543_v39  ;;  %v1064_v12 = vpop.f32.mrb[29].mxu1  ;;  %v774_v53 = vmul.f32 0.17677669, %v728_v62  ;;  %v1345_v3 = vsel %vm1283_vm2, %v1271_v19, 0 }
 0x121   : > { %3084 = vmatprep.subr.msk.bf16.mxu1 %vm1283_vm2, %v1278_v18  ;;  %v1065_v30 = vadd.f32 %v3543_v39, %v1064_v12  ;;  %v3007_v21 = vpop.f32.mrb[30].mxu1  ;;  %v772_v57 = vmul.f32 0.17677669, %v720_v52 }
 0x122   : > { %v1076_v58 = vadd.f32 %v3007_v21, %v3543_v39  ;;  %v1067_v20 = vpop.f32.mrb[31].mxu1 }
 0x123   : > { %v1068_v34 = vadd.f32 %v3543_v39, %v1067_v20  ;;  %v725_v39 = vadd.f32 %v2968_v40, %v3584_v59  ;;  %v1263_v6 = vpack.c.bf16 %v772_v57, %v771_v2  ;;  %v1351_v20 = vsel %vm1283_vm2, %v1273_v61, 0 }
 0x124   : > { %v1282_v18 = vpack.c.bf16 %v1076_v58, %v3716_v9 }
 0x125   : > { %v1281_v28 = vpack.c.bf16 %v1068_v34, %v1065_v30  ;;  %v773_v22 = vmul.f32 0.17677669, %v725_v39 }
 0x127   : > { %v1264_v46 = vpack.c.bf16 %v774_v53, %v773_v22 }
 0x128   : > { %2769 = vmatpush3.bf16.xpose.msra.mxu1 %v1342_v43 }
 0x129   : > { %3085 = vmatprep.subr.msk.bf16.mxu1 %vm1283_vm2, %v1279_v45  ;;  %v2972_v45 = vpop.f32.mrb[28].mxu0 }
 0x12a   : > { %v741_v8 = vadd.f32 %v2972_v45, %v3584_v59  ;;  %v732_v9 = vpop.f32.mrb[29].mxu0 }
 0x12b   : > { %v733_v12 = vadd.f32 %v3584_v59, %v732_v9  ;;  %v2973_v13 = vpop.f32.mrb[30].mxu0 }
 0x12c   : > { %v777_v17 = vmul.f32 0.17677669, %v741_v8  ;;  %v744_v30 = vadd.f32 %v2973_v13, %v3584_v59  ;;  %v735_v21 = vpop.f32.mrb[31].mxu0 }
 0x12d   : > { %v775_v55 = vmul.f32 0.17677669, %v733_v12  ;;  %v736_v10 = vadd.f32 %v3584_v59, %v735_v21  ;;  %v1354_v59 = vsel %vm1283_vm2, %v1274_v54, 0  ;;  %v3012_v4 = vpop.f32.mrb[32].mxu0 }
 0x12e   : > { %v778_v11 = vmul.f32 0.17677669, %v744_v30 }
 0x12f   : > { %v776_v19 = vmul.f32 0.17677669, %v736_v10 }
 0x130   : > { %2771 = vmatpush3.bf16.xpose.msra.mxu1 %v1345_v3  ;;  %v1266_v56 = vpack.c.bf16 %v778_v11, %v777_v17 }
 0x131   : > { %3086 = vmatprep.subr.msk.bf16.mxu1 %vm1283_vm2, %v1280_v24  ;;  %v1348_v24 = vsel %vm1283_vm2, %v1272_v16, 0  ;;  %v1265_v58 = vpack.c.bf16 %v776_v19, %v775_v55  ;;  %v1133_v16 = vadd.f32 %v3012_v4, %v3816_v5 }
 0x138   : > { %2773 = vmatpush3.bf16.xpose.msra.mxu1 %v1348_v24 }
 0x139   : > { %3087 = vmatprep.subr.msk.bf16.mxu1 %vm1283_vm2, %v1281_v28 }
 0x140   : > { %2775 = vmatpush3.bf16.xpose.msra.mxu1 %v1351_v20 }
 0x141   : > { %3088 = vmatprep.subr.msk.bf16.mxu1 %vm1283_vm2, %v1282_v18 }
 0x148   : > { %2777 = vmatpush3.bf16.xpose.msra.mxu1 %v1354_v59 }
 0x14f   : > { %2779 = vmatmul.mubr.msk.bf16.vlgmr.msra.gmra.mrb[32].mxu1 %vm1283_vm2, %v3616_v27 }
 0x150   : > { %2780 = vmatprep.mubr.msk.bf16.mxu1 %vm1283_vm2, %v3612_v23 }
 0x157   : > { %2781 = vmatmul.mubr.msk.bf16.gmra.mrb[36].mxu1 %vm1283_vm2, %v3612_v23  ;;  %v1124_v23 = vpop.f32.mrb[33].mxu0 }
 0x158   : > { %2782 = vmatprep.mubr.msk.bf16.mxu1 %vm1283_vm2, %v3646_v1  ;;  %v1125_v27 = vadd.f32 %v3816_v5, %v1124_v23  ;;  %v3013_v36 = vpop.f32.mrb[34].mxu0 }
 0x159   : > { %v1136_v15 = vadd.f32 %v3013_v36, %v3816_v5  ;;  %v1127_v44 = vpop.f32.mrb[35].mxu0 }
 0x15a   : > { %v1128_v49 = vadd.f32 %v3816_v5, %v1127_v44  ;;  %v3016_v54 = vpop.f32.mrb[36].mxu0 }
 0x15b   : > { %v1990_v61 = vpack.c.bf16 %v1136_v15, %v1133_v16 }
 0x15f   : > { %2783 = vmatmul.mubr.msk.bf16.gmra.mrb[40].mxu1 %vm1283_vm2, %v3646_v1  ;;  %v1140_v1 = vpop.f32.mrb[37].mxu0 }
 0x160   : > { %2784 = vmatprep.mubr.msk.bf16.mxu1 %vm1283_vm2, %v3642_v63 }
 0x167   : > { %2785 = vmatmul.mubr.msk.bf16.gmra.mrb[44].mxu1 %vm1283_vm2, %v3642_v63  ;;  %v3823_v63 = vadd.f32 %v3016_v54, %v3816_v5 }
 0x168   : > { %2786 = vmatprep.mubr.msk.bf16.mxu1 %vm1283_vm2, %v3667_v50 }
 0x16f   : > { %2787 = vmatmul.mubr.msk.bf16.gmra.mrb[48].mxu1 %vm1283_vm2, %v3667_v50  ;;  %v1141_v50 = vadd.f32 %v3816_v5, %v1140_v1 }
 0x170   : > { %2788 = vmatprep.mubr.msk.bf16.mxu1 %vm1283_vm2, %v3658_v38 }
 0x177   : > { %2789 = vmatmul.mubr.msk.bf16.gmra.mrb[52].mxu1 %vm1283_vm2, %v3658_v38  ;;  %v1989_v38 = vpack.c.bf16 %v1128_v49, %v1125_v27 }
 0x178   : > { %2790 = vmatprep.mubr.msk.bf16.mxu1 %vm1283_vm2, %v3688_v32 }
 0x17f   : > { %2791 = vmatmul.mubr.msk.bf16.gmra.mrb[56].mxu1 %vm1283_vm2, %v3688_v32 }
 0x180   : > { %2792 = vmatprep.mubr.msk.bf16.mxu1 %vm1283_vm2, %v3680_v25 }
 0x187   : > { %2793 = vmatmul.mubr.msk.bf16.gmra.mrb[60].mxu1 %vm1283_vm2, %v3680_v25  ;;  %v3017_v25 = vpop.f32.mrb[38].mxu0 }
 0x188   : > { %2794 = vmatprep.mubr.msk.bf16.mxu1 %vm1283_vm2, %v3713_v7  ;;  %v1152_v32 = vadd.f32 %v3017_v25, %v3816_v5 }
 0x18a   : > { %v1992_v31 = vpack.c.bf16 %v1152_v32, %v3823_v63 }
 0x18f   : > { %2795 = vmatmul.mubr.msk.bf16.gmra.mrb[64].mxu1 %vm1283_vm2, %v3713_v7 }
 0x190   : > { %2796 = vmatprep.mubr.msk.bf16.mxu1 %vm1283_vm2, %v3707_v48 }
 0x197   : > { %2797 = vmatmul.mubr.msk.bf16.gmra.mrb[68].mxu1 %vm1283_vm2, %v3707_v48  ;;  %v1143_v48 = vpop.f32.mrb[39].mxu0 }
 0x198   : > { %2798 = vmatprep.mubr.msk.bf16.mxu1 %vm1283_vm2, %v1261_v47  ;;  %v1144_v7 = vadd.f32 %v3816_v5, %v1143_v48  ;;  %v3020_v29 = vpop.f32.mrb[40].mxu0 }
 0x199   : > { %v3830_v33 = vadd.f32 %v3020_v29, %v3816_v5  ;;  %v1156_v34 = vpop.f32.mrb[41].mxu0 }
 0x19a   : > { %v1991_v14 = vpack.c.bf16 %v1144_v7, %v1141_v50  ;;  %v1157_v26 = vadd.f32 %v3816_v5, %v1156_v34  ;;  %v3021_v18 = vpop.f32.mrb[42].mxu0 }
 0x19b   : > { %v3834_v35 = vadd.f32 %v3021_v18, %v3816_v5  ;;  %v1159_v28 = vpop.f32.mrb[43].mxu0 }
 0x19c   : > { %v1160_v37 = vadd.f32 %v3816_v5, %v1159_v28 }
 0x19d   : > { %v1994_v43 = vpack.c.bf16 %v3834_v35, %v3830_v33 }
 0x19e   : > { %v1993_v39 = vpack.c.bf16 %v1160_v37, %v1157_v26 }
 0x19f   : > { %2799 = vmatmul.mubr.msk.bf16.gmra.mrb[72].mxu1 %vm1283_vm2, %v1261_v47 }
 0x1a0   : > { %2800 = vmatprep.mubr.msk.bf16.mxu1 %vm1283_vm2, %v3727_v42 }
 0x1a7   : > { %2801 = vmatmul.mubr.msk.bf16.gmra.mrb[76].mxu1 %vm1283_vm2, %v3727_v42  ;;  %v3024_v42 = vpop.f32.mrb[44].mxu0 }
 0x1a8   : > { %2802 = vmatprep.mubr.msk.bf16.mxu1 %vm1283_vm2, %v1263_v6  ;;  %v3840_v47 = vadd.f32 %v3024_v42, %v3816_v5  ;;  %v1172_v40 = vpop.f32.mrb[45].mxu0 }
 0x1a9   : > { %v1173_v41 = vadd.f32 %v3816_v5, %v1172_v40  ;;  %v3025_v51 = vpop.f32.mrb[46].mxu0 }
 0x1aa   : > { %v1184_v60 = vadd.f32 %v3025_v51, %v3816_v5  ;;  %v1175_v22 = vpop.f32.mrb[47].mxu0 }
 0x1ab   : > { %v1176_v62 = vadd.f32 %v3816_v5, %v1175_v22  ;;  %v3028_v0 = vpop.f32.mrb[48].mxu0 }
 0x1ac   : > { %v1996_v2 = vpack.c.bf16 %v1184_v60, %v3840_v47  ;;  %v1197_v52 = vadd.f32 %v3028_v0, %v3816_v5  ;;  %v1188_v53 = vpop.f32.mrb[49].mxu0 }
 0x1ad   : > { %v1995_v57 = vpack.c.bf16 %v1176_v62, %v1173_v41  ;;  %v3029_v3 = vpop.f32.mrb[50].mxu0 }
 0x1ae   : > { %v1191_v45 = vpop.f32.mrb[51].mxu0 }
 0x1af   : > { %2803 = vmatmul.mubr.msk.bf16.gmra.mrb[80].mxu1 %vm1283_vm2, %v1263_v6  ;;  %v1200_v6 = vadd.f32 %v3029_v3, %v3816_v5  ;;  %v1192_v8 = vadd.f32 %v3816_v5, %v1191_v45  ;;  %v3032_v13 = vpop.f32.mrb[52].mxu0 }
 0x1b0   : > { %2804 = vmatprep.mubr.msk.bf16.mxu1 %vm1283_vm2, %v1264_v46  ;;  %v1213_v17 = vadd.f32 %v3032_v13, %v3816_v5  ;;  %v1204_v30 = vpop.f32.mrb[53].mxu0 }
 0x1b1   : > { %v1998_v9 = vpack.c.bf16 %v1200_v6, %v1197_v52  ;;  %v1205_v21 = vadd.f32 %v3816_v5, %v1204_v30  ;;  %v3033_v55 = vpop.f32.mrb[54].mxu0 }
 0x1b2   : > { %v1216_v10 = vadd.f32 %v3033_v55, %v3816_v5  ;;  %v1207_v11 = vpop.f32.mrb[55].mxu0 }
 0x1b3   : > { %v1208_v19 = vadd.f32 %v3816_v5, %v1207_v11 }
 0x1b4   : > { %v2000_v24 = vpack.c.bf16 %v1216_v10, %v1213_v17 }
 0x1b7   : > { %2805 = vmatmul.mubr.msk.bf16.gmra.mrb[84].mxu1 %vm1283_vm2, %v1264_v46  ;;  %v1189_v46 = vadd.f32 %v3816_v5, %v1188_v53 }
 0x1b8   : > { %2806 = vmatprep.mubr.msk.bf16.mxu1 %vm1283_vm2, %v1265_v58 }
 0x1b9   : > { %v1997_v12 = vpack.c.bf16 %v1192_v8, %v1189_v46 }
 0x1bb   : > { %2810 = vmatprep.subr.bf16.mxu0 %v1997_v12 }
 0x1bc   : > { %2811 = vmatpush3.bf16.msra.mxu0 %v1989_v38 }
 0x1bd   : > { %2812 = vmatprep.subr.bf16.mxu0 %v1998_v9 }
 0x1bf   : > { %2807 = vmatmul.mubr.msk.bf16.gmra.mrb[88].mxu1 %vm1283_vm2, %v1265_v58  ;;  %v3036_v58 = vpop.f32.mrb[56].mxu0 }
 0x1c0   : > { %2808 = vmatprep.mubr.msk.bf16.mxu1 %vm1283_vm2, %v1266_v56  ;;  %2813 = vmatpush3.bf16.msra.mxu0 %v1990_v61  ;;  %v1229_v20 = vadd.f32 %v3036_v58, %v3816_v5  ;;  %v1220_v59 = vpop.f32.mrb[57].mxu0 }
 0x1c1   : > { %v1221_v4 = vadd.f32 %v3816_v5, %v1220_v59  ;;  %v3037_v16 = vpop.f32.mrb[58].mxu0 }
 0x1c2   : > { %v1232_v23 = vadd.f32 %v3037_v16, %v3816_v5  ;;  %v1223_v27 = vpop.f32.mrb[59].mxu0 }
 0x1c3   : > { %v1224_v36 = vadd.f32 %v3816_v5, %v1223_v27  ;;  %v3040_v49 = vpop.f32.mrb[60].mxu0 }
 0x1c4   : > { %v2002_v15 = vpack.c.bf16 %v1232_v23, %v1229_v20  ;;  %v1245_v54 = vadd.f32 %v3040_v49, %v3816_v5  ;;  %v1236_v61 = vpop.f32.mrb[61].mxu0 }
 0x1c5   : > { %v2001_v44 = vpack.c.bf16 %v1224_v36, %v1221_v4  ;;  %v1237_v63 = vadd.f32 %v3816_v5, %v1236_v61  ;;  %v3041_v1 = vpop.f32.mrb[62].mxu0 }
 0x1c6   : > { %v1248_v38 = vadd.f32 %v3041_v1, %v3816_v5  ;;  %v1239_v50 = vpop.f32.mrb[63].mxu0 }
 0x1c7   : > { %2809 = vmatmul.mubr.msk.bf16.gmra.mrb[92].mxu1 %vm1283_vm2, %v1266_v56  ;;  %v1999_v56 = vpack.c.bf16 %v1208_v19, %v1205_v21  ;;  %v1240_v25 = vadd.f32 %v3816_v5, %v1239_v50 }
 0x1c8   : > { %v2004_v32 = vpack.c.bf16 %v1248_v38, %v1245_v54 }
 0x1c9   : > { %2814 = vmatprep.subr.bf16.mxu0 %v1999_v56  ;;  %v2003_v48 = vpack.c.bf16 %v1240_v25, %v1237_v63 }
 0x1ca   : > { %2815 = vmatpush3.bf16.msra.mxu0 %v1991_v14 }
 0x1cb   : > { %2816 = vmatprep.subr.bf16.mxu0 %v2000_v24 }
 0x1ce   : > { %2817 = vmatpush3.bf16.msra.mxu0 %v1992_v31 }
 0x1cf   : > { %2818 = vmatprep.subr.bf16.mxu0 %v2001_v44 }
 0x1d2   : > { %2819 = vmatpush3.bf16.msra.mxu0 %v1993_v39 }
 0x1d3   : > { %2820 = vmatprep.subr.bf16.mxu0 %v2002_v15 }
 0x1d6   : > { %2821 = vmatpush3.bf16.msra.mxu0 %v1994_v43 }
 0x1d7   : > { %2822 = vmatprep.subr.bf16.mxu0 %v2003_v48 }
 0x1da   : > { %2823 = vmatpush3.bf16.msra.mxu0 %v1995_v57 }
 0x1db   : > { %2824 = vmatprep.subr.bf16.mxu0 %v2004_v32 }
 0x1de   : > { %2825 = vmatpush3.bf16.msra.mxu0 %v1996_v2 }
 0x222   : > { %v3862_v7 = vpop.f32.mrb[32].mxu1 }
 0x223   : > { %v3864_v29 = vpop.f32.mrb[33].mxu1 }
 0x224   : > { %v3866_v31 = vpop.f32.mrb[34].mxu1  ;;  %v1573_v33 = vmax.f32 %v3862_v7, %v3864_v29 }
 0x225   : > { %v3870_v34 = vpop.f32.mrb[35].mxu1 }
 0x226   : > { %1574 = vmax.xlane.f32.xlu0 %v1573_v33  ;;  %v1576_v5 = vmax.f32 %v3866_v31, %v3870_v34 }
 0x22a   : > { %1577 = vmax.xlane.f32.xlu0 %v1576_v5  ;;  %v3874_v14 = vpop.f32.mrb[36].mxu1 }
 0x22b   : > { %v3876_v26 = vpop.f32.mrb[37].mxu1 }
 0x22c   : > { %v3878_v18 = vpop.f32.mrb[38].mxu1  ;;  %v1579_v35 = vmax.f32 %v3874_v14, %v3876_v26 }
 0x22d   : > { %v3882_v28 = vpop.f32.mrb[39].mxu1 }
 0x22e   : > { %1580 = vmax.xlane.f32.xlu1 %v1579_v35  ;;  %v1582_v37 = vmax.f32 %v3878_v18, %v3882_v28 }
 0x232   : > { %1583 = vmax.xlane.f32.xlu1 %v1582_v37  ;;  %v3886_v42 = vpop.f32.mrb[40].mxu1 }
 0x233   : > { %v3888_v43 = vpop.f32.mrb[41].mxu1 }
 0x234   : > { %v3890_v47 = vpop.f32.mrb[42].mxu1  ;;  %v1585_v40 = vmax.f32 %v3886_v42, %v3888_v43 }
 0x235   : > { %v3894_v39 = vpop.f32.mrb[43].mxu1 }
 0x236   : > { %1586 = vmax.xlane.f32.xlu0 %v1585_v40  ;;  %v1588_v41 = vmax.f32 %v3890_v47, %v3894_v39 }
 0x238   : > { %1589 = vmax.xlane.f32.xlu1 %v1588_v41 }
 0x23a   : > { %v3898_v51 = vpop.f32.mrb[44].mxu1 }
 0x23b   : > { %v3900_v60 = vpop.f32.mrb[45].mxu1 }
 0x23c   : > { %v3902_v22 = vpop.f32.mrb[46].mxu1  ;;  %v1591_v62 = vmax.f32 %v3898_v51, %v3900_v60 }
 0x23d   : > { %v3906_v0 = vpop.f32.mrb[47].mxu1 }
 0x23e   : > { %1592 = vmax.xlane.f32.xlu0 %v1591_v62  ;;  %v1594_v2 = vmax.f32 %v3902_v22, %v3906_v0 }
 0x240   : > { %1595 = vmax.xlane.f32.xlu1 %v1594_v2 }
 0x242   : > { %v3910_v52 = vpop.f32.mrb[48].mxu1 }
 0x243   : > { %v3912_v53 = vpop.f32.mrb[49].mxu1 }
 0x244   : > { %v3914_v57 = vpop.f32.mrb[50].mxu1  ;;  %v1597_v46 = vmax.f32 %v3910_v52, %v3912_v53 }
 0x245   : > { %v3918_v3 = vpop.f32.mrb[51].mxu1 }
 0x246   : > { %1598 = vmax.xlane.f32.xlu0 %v1597_v46  ;;  %v1600_v6 = vmax.f32 %v3914_v57, %v3918_v3 }
 0x248   : > { %1601 = vmax.xlane.f32.xlu1 %v1600_v6 }
 0x24a   : > { %v3922_v45 = vpop.f32.mrb[52].mxu1 }
 0x24b   : > { %v3924_v8 = vpop.f32.mrb[53].mxu1 }
 0x24c   : > { %v3926_v9 = vpop.f32.mrb[54].mxu1  ;;  %v1603_v12 = vmax.f32 %v3922_v45, %v3924_v8 }
 0x24d   : > { %v3930_v13 = vpop.f32.mrb[55].mxu1 }
 0x24e   : > { %1604 = vmax.xlane.f32.xlu0 %v1603_v12  ;;  %v1606_v17 = vmax.f32 %v3926_v9, %v3930_v13 }
 0x250   : > { %1607 = vmax.xlane.f32.xlu1 %v1606_v17 }
 0x252   : > { %v3934_v30 = vpop.f32.mrb[56].mxu1 }
 0x253   : > { %v3936_v21 = vpop.f32.mrb[57].mxu1 }
 0x254   : > { %v3938_v55 = vpop.f32.mrb[58].mxu1  ;;  %v1609_v10 = vmax.f32 %v3934_v30, %v3936_v21 }
 0x255   : > { %v3942_v11 = vpop.f32.mrb[59].mxu1 }
 0x256   : > { %1610 = vmax.xlane.f32.xlu0 %v1609_v10  ;;  %v1612_v19 = vmax.f32 %v3938_v55, %v3942_v11 }
 0x258   : > { %1613 = vmax.xlane.f32.xlu1 %v1612_v19 }
 0x25a   : > { %v3946_v24 = vpop.f32.mrb[60].mxu1 }
 0x25b   : > { %v3948_v56 = vpop.f32.mrb[61].mxu1 }
 0x25c   : > { %v3950_v58 = vpop.f32.mrb[62].mxu1  ;;  %v1615_v20 = vmax.f32 %v3946_v24, %v3948_v56 }
 0x25d   : > { %v3954_v59 = vpop.f32.mrb[63].mxu1 }
 0x25e   : > { %1616 = vmax.xlane.f32.xlu0 %v1615_v20  ;;  %v1618_v4 = vmax.f32 %v3950_v58, %v3954_v59 }
 0x260   : > { %1619 = vmax.xlane.f32.xlu1 %v1618_v4 }
 0x262   : > { %v3958_v16 = vpop.f32.mrb[64].mxu1 }
 0x263   : > { %v3960_v23 = vpop.f32.mrb[65].mxu1 }
 0x264   : > { %v3962_v27 = vpop.f32.mrb[66].mxu1  ;;  %v1621_v36 = vmax.f32 %v3958_v16, %v3960_v23 }
 0x265   : > { %v3966_v15 = vpop.f32.mrb[67].mxu1 }
 0x266   : > { %1622 = vmax.xlane.f32.xlu0 %v1621_v36  ;;  %v1624_v44 = vmax.f32 %v3962_v27, %v3966_v15 }
 0x268   : > { %1625 = vmax.xlane.f32.xlu1 %v1624_v44 }
 0x26a   : > { %v3970_v49 = vpop.f32.mrb[68].mxu1 }
 0x26b   : > { %v3972_v54 = vpop.f32.mrb[69].mxu1 }
 0x26c   : > { %v3974_v61 = vpop.f32.mrb[70].mxu1  ;;  %v1627_v63 = vmax.f32 %v3970_v49, %v3972_v54 }
 0x26d   : > { %v3978_v1 = vpop.f32.mrb[71].mxu1 }
 0x26e   : > { %1628 = vmax.xlane.f32.xlu0 %v1627_v63  ;;  %v1630_v38 = vmax.f32 %v3974_v61, %v3978_v1 }
 0x270   : > { %1631 = vmax.xlane.f32.xlu1 %v1630_v38 }
 0x272   : > { %v3982_v50 = vpop.f32.mrb[72].mxu1 }
 0x273   : > { %v3984_v25 = vpop.f32.mrb[73].mxu1 }
 0x274   : > { %v3986_v32 = vpop.f32.mrb[74].mxu1  ;;  %v1633_v48 = vmax.f32 %v3982_v50, %v3984_v25 }
 0x275   : > { %v3990_v33 = vpop.f32.mrb[75].mxu1 }
 0x276   : > { %1634 = vmax.xlane.f32.xlu0 %v1633_v48  ;;  %v1636_v5 = vmax.f32 %v3986_v32, %v3990_v33 }
 0x278   : > { %1637 = vmax.xlane.f32.xlu1 %v1636_v5 }
 0x27a   : > { %v3994_v35 = vpop.f32.mrb[76].mxu1 }
 0x27b   : > { %v3996_v37 = vpop.f32.mrb[77].mxu1 }
 0x27c   : > { %v3998_v40 = vpop.f32.mrb[78].mxu1  ;;  %v1639_v41 = vmax.f32 %v3994_v35, %v3996_v37 }
 0x27d   : > { %v4002_v62 = vpop.f32.mrb[79].mxu1 }
 0x27e   : > { %1640 = vmax.xlane.f32.xlu0 %v1639_v41  ;;  %v1642_v2 = vmax.f32 %v3998_v40, %v4002_v62 }
 0x280   : > { %1643 = vmax.xlane.f32.xlu1 %v1642_v2 }
 0x282   : > { %v4006_v46 = vpop.f32.mrb[80].mxu1 }
 0x283   : > { %v4008_v6 = vpop.f32.mrb[81].mxu1 }
 0x284   : > { %v4010_v12 = vpop.f32.mrb[82].mxu1  ;;  %v1645_v17 = vmax.f32 %v4006_v46, %v4008_v6 }
 0x285   : > { %4274 = vst [vmem:[#allocation2_spill] sm:$0xff] %v4010_v12  ;;  %v4014_v10 = vpop.f32.mrb[83].mxu1 }
 0x286   : > { %4275 = vst [vmem:[#allocation3_spill] sm:$0xff] %v4014_v10  ;;  %1646 = vmax.xlane.f32.xlu0 %v1645_v17  ;;  %v1648_v19 = vmax.f32 %v4010_v12, %v4014_v10 }
 0x288   : > { %1649 = vmax.xlane.f32.xlu1 %v1648_v19 }
 0x28a   : > { %v4018_v20 = vpop.f32.mrb[84].mxu1 }
 0x28b   : > { %4276 = vst [vmem:[#allocation4_spill] sm:$0xff] %v4018_v20  ;;  %v4020_v4 = vpop.f32.mrb[85].mxu1 }
 0x28c   : > { %4277 = vst [vmem:[#allocation5_spill] sm:$0xff] %v4020_v4  ;;  %v4022_v36 = vpop.f32.mrb[86].mxu1  ;;  %v1651_v44 = vmax.f32 %v4018_v20, %v4020_v4 }
 0x28d   : > { %4278 = vst [vmem:[#allocation6_spill] sm:$0xff] %v4022_v36  ;;  %v4026_v63 = vpop.f32.mrb[87].mxu1 }
 0x28e   : > { %4279 = vst [vmem:[#allocation7_spill] sm:$0xff] %v4026_v63  ;;  %1652 = vmax.xlane.f32.xlu0 %v1651_v44  ;;  %v1654_v38 = vmax.f32 %v4022_v36, %v4026_v63 }
 0x290   : > { %1655 = vmax.xlane.f32.xlu1 %v1654_v38 }
 0x292   : > { %v4030_v48 = vpop.f32.mrb[88].mxu1 }
 0x293   : > { %4280 = vst [vmem:[#allocation8_spill] sm:$0xff] %v4030_v48  ;;  %v4032_v5 = vpop.f32.mrb[89].mxu1 }
 0x294   : > { %4281 = vst [vmem:[#allocation9_spill] sm:$0xff] %v4032_v5  ;;  %v4034_v41 = vpop.f32.mrb[90].mxu1  ;;  %v1657_v2 = vmax.f32 %v4030_v48, %v4032_v5 }
 0x295   : > { %4282 = vst [vmem:[#allocation10_spill] sm:$0xff] %v4034_v41  ;;  %v4038_v17 = vpop.f32.mrb[91].mxu1 }
 0x296   : > { %4283 = vst [vmem:[#allocation11_spill] sm:$0xff] %v4038_v17  ;;  %1658 = vmax.xlane.f32.xlu0 %v1657_v2  ;;  %v1660_v19 = vmax.f32 %v4034_v41, %v4038_v17 }
 0x298   : > { %1661 = vmax.xlane.f32.xlu1 %v1660_v19 }
 0x29a   : > { %v4042_v44 = vpop.f32.mrb[92].mxu1 }
 0x29b   : > { %4284 = vst [vmem:[#allocation12_spill] sm:$0xff] %v4042_v44  ;;  %v4044_v63 = vpop.f32.mrb[93].mxu1 }
 0x29c   : > { %4285 = vst [vmem:[#allocation13_spill] sm:$0xff] %v4044_v63  ;;  %v4046_v38 = vpop.f32.mrb[94].mxu1  ;;  %v1663_v36 = vmax.f32 %v4042_v44, %v4044_v63 }
 0x29d   : > { %v4050_v4 = vpop.f32.mrb[95].mxu1 }
 0x29e   : > { %4286 = vst [vmem:[#allocation14_spill] sm:$0xff] %v4050_v4  ;;  %1664 = vmax.xlane.f32.xlu0 %v1663_v36  ;;  %v1666_v5 = vmax.f32 %v4046_v38, %v4050_v4 }
 0x2a0   : > { %1667 = vmax.xlane.f32.xlu1 %v1666_v5 }
 0x2b3   : > { %v1575_v2 = vpop.xlane.xlu0 %1574 }
 0x2b4   : > { %v1669_v17 = vsub.f32 %v3862_v7, %v1575_v2  ;;  %v1670_v19 = vsub.f32 %v3864_v29, %v1575_v2 }
 0x2b6   : > { %v1733_v41 = vmul.f32 1.442695, %v1669_v17  ;;  %v1735_v48 = vmul.f32 1.442695, %v1670_v19 }
 0x2b7   : > { %v1578_v20 = vpop.xlane.xlu0 %1577 }
 0x2b8   : > { %3131 = vpow2.f32 %v1733_v41  ;;  %v1671_v10 = vsub.f32 %v3866_v31, %v1578_v20  ;;  %v1672_v63 = vsub.f32 %v3870_v34, %v1578_v20 }
 0x2b9   : > { %3133 = vpow2.f32 %v1735_v48 }
 0x2ba   : > { %v1737_v44 = vmul.f32 1.442695, %v1671_v10  ;;  %v1739_v36 = vmul.f32 1.442695, %v1672_v63 }
 0x2bb   : > { %v1581_v12 = vpop.xlane.xlu1 %1580 }
 0x2bc   : > { %3135 = vpow2.f32 %v1737_v44  ;;  %v1673_v5 = vsub.f32 %v3874_v14, %v1581_v12  ;;  %v1674_v4 = vsub.f32 %v3876_v26, %v1581_v12 }
 0x2bd   : > { %3137 = vpow2.f32 %v1739_v36 }
 0x2be   : > { %v1741_v7 = vmul.f32 1.442695, %v1673_v5  ;;  %v1743_v29 = vmul.f32 1.442695, %v1674_v4 }
 0x2bf   : > { %v1584_v17 = vpop.xlane.xlu1 %1583 }
 0x2c0   : > { %3139 = vpow2.f32 %v1741_v7  ;;  %v1675_v41 = vsub.f32 %v3878_v18, %v1584_v17  ;;  %v1676_v31 = vsub.f32 %v3882_v28, %v1584_v17 }
 0x2c1   : > { %3141 = vpow2.f32 %v1743_v29 }
 0x2c2   : > { %v3132_v34 = vpop.eup %3131  ;;  %v1745_v20 = vmul.f32 1.442695, %v1675_v41  ;;  %v1747_v10 = vmul.f32 1.442695, %v1676_v31 }
 0x2c3   : > { %v3134_v63 = vpop.eup %3133  ;;  %v1587_v48 = vpop.xlane.xlu0 %1586 }
 0x2c4   : > { %3143 = vpow2.f32 %v1745_v20  ;;  %v1677_v14 = vsub.f32 %v3886_v42, %v1587_v48  ;;  %v1678_v26 = vsub.f32 %v3888_v43, %v1587_v48  ;;  %v1861_v12 = vadd.f32 %v3134_v63, %v3132_v34 }
 0x2c5   : > { %3145 = vpow2.f32 %v1747_v10  ;;  %v1590_v4 = vpop.xlane.xlu1 %1589 }
 0x2c6   : > { %v3136_v44 = vpop.eup %3135  ;;  %v1749_v2 = vmul.f32 1.442695, %v1677_v14  ;;  %v1751_v19 = vmul.f32 1.442695, %v1678_v26  ;;  %v1679_v18 = vsub.f32 %v3890_v47, %v1590_v4  ;;  %v1680_v28 = vsub.f32 %v3894_v39, %v1590_v4  ;;  %1862 = vadd.xlane.f32.xlu0 %v1861_v12 }
 0x2c7   : > { %v3138_v36 = vpop.eup %3137  ;;  %v1957_v5 = vpack.c.bf16 %v3136_v44, %v3132_v34 }
 0x2c8   : > { %3147 = vpow2.f32 %v1749_v2  ;;  %v1753_v7 = vmul.f32 1.442695, %v1679_v18  ;;  %v1755_v29 = vmul.f32 1.442695, %v1680_v28  ;;  %v1958_v17 = vpack.c.bf16 %v3138_v36, %v3134_v63 }
 0x2c9   : > { %3149 = vpow2.f32 %v1751_v19  ;;  %v1864_v42 = vadd.f32 %v3138_v36, %v3136_v44 }
 0x2ca   : > { %v3140_v43 = vpop.eup %3139  ;;  %3151 = vpow2.f32 %v1753_v7  ;;  %2037 = vmatprep.mubr.bf16.mxu0 %v1958_v17 }
 0x2cb   : > { %v3142_v41 = vpop.eup %3141  ;;  %3153 = vpow2.f32 %v1755_v29  ;;  %1865 = vadd.xlane.f32.xlu1 %v1864_v42  ;;  %2038 = vmatmul.mubr.bf16.vlgmr.msra.gmra.mrb[64].mxu0 %v1957_v5  ;;  %v1593_v31 = vpop.xlane.xlu0 %1592 }
 0x2cc   : > { %v1681_v47 = vsub.f32 %v3898_v51, %v1593_v31  ;;  %v1682_v39 = vsub.f32 %v3900_v60, %v1593_v31  ;;  %v1867_v20 = vadd.f32 %v3142_v41, %v3140_v43 }
 0x2cd   : > { %v1596_v34 = vpop.xlane.xlu1 %1595 }
 0x2ce   : > { %v3144_v10 = vpop.eup %3143  ;;  %v1757_v48 = vmul.f32 1.442695, %v1681_v47  ;;  %v1759_v14 = vmul.f32 1.442695, %v1682_v39  ;;  %v1683_v63 = vsub.f32 %v3902_v22, %v1596_v34  ;;  %v1684_v26 = vsub.f32 %v3906_v0, %v1596_v34  ;;  %1868 = vadd.xlane.f32.xlu0 %v1867_v20 }
 0x2cf   : > { %v3146_v12 = vpop.eup %3145  ;;  %v1959_v4 = vpack.c.bf16 %v3144_v10, %v3140_v43 }
 0x2d0   : > { %3155 = vpow2.f32 %v1757_v48  ;;  %v1761_v44 = vmul.f32 1.442695, %v1683_v63  ;;  %v1763_v2 = vmul.f32 1.442695, %v1684_v26  ;;  %v1960_v19 = vpack.c.bf16 %v3146_v12, %v3142_v41 }
 0x2d1   : > { %3157 = vpow2.f32 %v1759_v14  ;;  %v1870_v51 = vadd.f32 %v3146_v12, %v3144_v10 }
 0x2d2   : > { %v3148_v18 = vpop.eup %3147  ;;  %3159 = vpow2.f32 %v1761_v44  ;;  %2045 = vmatprep.mubr.bf16.mxu0 %v1960_v19 }
 0x2d3   : > { %v3150_v60 = vpop.eup %3149  ;;  %3161 = vpow2.f32 %v1763_v2  ;;  %1871 = vadd.xlane.f32.xlu1 %v1870_v51  ;;  %2046 = vmatmul.mubr.bf16.gmra.mrb[68].mxu0 %v1959_v4  ;;  %v1599_v28 = vpop.xlane.xlu0 %1598 }
 0x2d4   : > { %v3152_v22 = vpop.eup %3151  ;;  %v1685_v0 = vsub.f32 %v3910_v52, %v1599_v28  ;;  %v1686_v36 = vsub.f32 %v3912_v53, %v1599_v28  ;;  %v1873_v5 = vadd.f32 %v3150_v60, %v3148_v18 }
 0x2d5   : > { %v3154_v7 = vpop.eup %3153  ;;  %v1602_v29 = vpop.xlane.xlu1 %1601  ;;  %v1961_v17 = vpack.c.bf16 %v3152_v22, %v3148_v18 }
 0x2d6   : > { %v1765_v42 = vmul.f32 1.442695, %v1685_v0  ;;  %v1767_v43 = vmul.f32 1.442695, %v1686_v36  ;;  %v1687_v41 = vsub.f32 %v3914_v57, %v1602_v29  ;;  %v1688_v31 = vsub.f32 %v3918_v3, %v1602_v29  ;;  %1874 = vadd.xlane.f32.xlu0 %v1873_v5 }
 0x2d7   : > { %v1962_v47 = vpack.c.bf16 %v3154_v7, %v3150_v60  ;;  %v1876_v39 = vadd.f32 %v3154_v7, %v3152_v22 }
 0x2d8   : > { %3163 = vpow2.f32 %v1765_v42  ;;  %v1769_v20 = vmul.f32 1.442695, %v1687_v41  ;;  %v1771_v34 = vmul.f32 1.442695, %v1688_v31 }
 0x2d9   : > { %3165 = vpow2.f32 %v1767_v43  ;;  %2053 = vmatprep.mubr.bf16.mxu0 %v1962_v47  ;;  %1877 = vadd.xlane.f32.xlu1 %v1876_v39  ;;  %v3129_v39 = vld [vmem:[%s4255_s5] sm:$0xff]  }
 0x2da   : > { %v3156_v52 = vpop.eup %3155  ;;  %3167 = vpow2.f32 %v1769_v20  ;;  %3042 = vmatprep.subr.bf16.mxu1 %v3129_v39 }
 0x2db   : > { %v3158_v53 = vpop.eup %3157  ;;  %3169 = vpow2.f32 %v1771_v34  ;;  %2054 = vmatmul.mubr.bf16.gmra.mrb[72].mxu0 %v1961_v17  ;;  %v1605_v10 = vpop.xlane.xlu0 %1604  ;;  %3043 = vmatpush3.bf16.msra.mxu1 %v3129_v39 }
 0x2dc   : > { %v3160_v48 = vpop.eup %3159  ;;  %v1689_v57 = vsub.f32 %v3922_v45, %v1605_v10  ;;  %v1690_v3 = vsub.f32 %v3924_v8, %v1605_v10  ;;  %v1879_v14 = vadd.f32 %v3158_v53, %v3156_v52 }
 0x2dd   : > { %v3162_v63 = vpop.eup %3161  ;;  %v1608_v26 = vpop.xlane.xlu1 %1607  ;;  %v1963_v12 = vpack.c.bf16 %v3160_v48, %v3156_v52 }
 0x2de   : > { %v1773_v4 = vmul.f32 1.442695, %v1689_v57  ;;  %v1775_v44 = vmul.f32 1.442695, %v1690_v3  ;;  %v1691_v2 = vsub.f32 %v3926_v9, %v1608_v26  ;;  %v1692_v19 = vsub.f32 %v3930_v13, %v1608_v26  ;;  %1880 = vadd.xlane.f32.xlu0 %v1879_v14 }
 0x2df   : > { %v1964_v51 = vpack.c.bf16 %v3162_v63, %v3158_v53  ;;  %v1882_v18 = vadd.f32 %v3162_v63, %v3160_v48 }
 0x2e0   : > { %3171 = vpow2.f32 %v1773_v4  ;;  %v1777_v60 = vmul.f32 1.442695, %v1691_v2  ;;  %v1779_v28 = vmul.f32 1.442695, %v1692_v19 }
 0x2e1   : > { %3173 = vpow2.f32 %v1775_v44  ;;  %2061 = vmatprep.mubr.bf16.mxu0 %v1964_v51  ;;  %1883 = vadd.xlane.f32.xlu1 %v1882_v18 }
 0x2e2   : > { %v3164_v45 = vpop.eup %3163  ;;  %3175 = vpow2.f32 %v1777_v60 }
 0x2e3   : > { %v3166_v8 = vpop.eup %3165  ;;  %3177 = vpow2.f32 %v1779_v28  ;;  %2062 = vmatmul.mubr.bf16.gmra.mrb[76].mxu0 %v1963_v12  ;;  %v1611_v22 = vpop.xlane.xlu0 %1610 }
 0x2e4   : > { %v3168_v0 = vpop.eup %3167  ;;  %v1693_v9 = vsub.f32 %v3934_v30, %v1611_v22  ;;  %v1694_v13 = vsub.f32 %v3936_v21, %v1611_v22  ;;  %v1885_v36 = vadd.f32 %v3166_v8, %v3164_v45 }
 0x2e5   : > { %v3170_v5 = vpop.eup %3169  ;;  %v1614_v7 = vpop.xlane.xlu1 %1613  ;;  %v1965_v29 = vpack.c.bf16 %v3168_v0, %v3164_v45 }
 0x2e6   : > { %v1781_v17 = vmul.f32 1.442695, %v1693_v9  ;;  %v1783_v42 = vmul.f32 1.442695, %v1694_v13  ;;  %v1695_v43 = vsub.f32 %v3938_v55, %v1614_v7  ;;  %v1696_v41 = vsub.f32 %v3942_v11, %v1614_v7  ;;  %1886 = vadd.xlane.f32.xlu0 %v1885_v36 }
 0x2e7   : > { %v1966_v31 = vpack.c.bf16 %v3170_v5, %v3166_v8  ;;  %v1888_v47 = vadd.f32 %v3170_v5, %v3168_v0 }
 0x2e8   : > { %3179 = vpow2.f32 %v1781_v17  ;;  %v1785_v30 = vmul.f32 1.442695, %v1695_v43  ;;  %v1787_v21 = vmul.f32 1.442695, %v1696_v41 }
 0x2e9   : > { %3181 = vpow2.f32 %v1783_v42  ;;  %2069 = vmatprep.mubr.bf16.mxu0 %v1966_v31  ;;  %1889 = vadd.xlane.f32.xlu1 %v1888_v47 }
 0x2ea   : > { %v3172_v20 = vpop.eup %3171  ;;  %3183 = vpow2.f32 %v1785_v30 }
 0x2eb   : > { %v3174_v34 = vpop.eup %3173  ;;  %3185 = vpow2.f32 %v1787_v21  ;;  %2070 = vmatmul.mubr.bf16.gmra.mrb[80].mxu0 %v1965_v29  ;;  %v1617_v55 = vpop.xlane.xlu0 %1616 }
 0x2ec   : > { %v3176_v11 = vpop.eup %3175  ;;  %v1697_v52 = vsub.f32 %v3946_v24, %v1617_v55  ;;  %v1698_v53 = vsub.f32 %v3948_v56, %v1617_v55  ;;  %v1891_v10 = vadd.f32 %v3174_v34, %v3172_v20 }
 0x2ed   : > { %v3178_v48 = vpop.eup %3177  ;;  %v1620_v57 = vpop.xlane.xlu1 %1619  ;;  %v1967_v3 = vpack.c.bf16 %v3176_v11, %v3172_v20 }
 0x2ee   : > { %v1789_v14 = vmul.f32 1.442695, %v1697_v52  ;;  %v1791_v63 = vmul.f32 1.442695, %v1698_v53  ;;  %v1699_v26 = vsub.f32 %v3950_v58, %v1620_v57  ;;  %v1700_v12 = vsub.f32 %v3954_v59, %v1620_v57  ;;  %1892 = vadd.xlane.f32.xlu0 %v1891_v10 }
 0x2ef   : > { %v1968_v4 = vpack.c.bf16 %v3178_v48, %v3174_v34  ;;  %v1894_v44 = vadd.f32 %v3178_v48, %v3176_v11 }
 0x2f0   : > { %3187 = vpow2.f32 %v1789_v14  ;;  %v1793_v2 = vmul.f32 1.442695, %v1699_v26  ;;  %v1795_v19 = vmul.f32 1.442695, %v1700_v12 }
 0x2f1   : > { %3189 = vpow2.f32 %v1791_v63  ;;  %2077 = vmatprep.mubr.bf16.mxu0 %v1968_v4  ;;  %1895 = vadd.xlane.f32.xlu1 %v1894_v44 }
 0x2f2   : > { %v3180_v24 = vpop.eup %3179  ;;  %3191 = vpow2.f32 %v1793_v2 }
 0x2f3   : > { %v3182_v56 = vpop.eup %3181  ;;  %3193 = vpow2.f32 %v1795_v19  ;;  %2078 = vmatmul.mubr.bf16.gmra.mrb[84].mxu0 %v1967_v3  ;;  %v1623_v51 = vpop.xlane.xlu0 %1622 }
 0x2f4   : > { %v3184_v18 = vpop.eup %3183  ;;  %v1701_v58 = vsub.f32 %v3958_v16, %v1623_v51  ;;  %v1702_v59 = vsub.f32 %v3960_v23, %v1623_v51  ;;  %v1897_v60 = vadd.f32 %v3182_v56, %v3180_v24 }
 0x2f5   : > { %v3186_v28 = vpop.eup %3185  ;;  %v1626_v45 = vpop.xlane.xlu1 %1625  ;;  %v1969_v8 = vpack.c.bf16 %v3184_v18, %v3180_v24 }
 0x2f6   : > { %v1797_v22 = vmul.f32 1.442695, %v1701_v58  ;;  %v1799_v0 = vmul.f32 1.442695, %v1702_v59  ;;  %v1703_v9 = vsub.f32 %v3962_v27, %v1626_v45  ;;  %v1704_v13 = vsub.f32 %v3966_v15, %v1626_v45  ;;  %1898 = vadd.xlane.f32.xlu0 %v1897_v60 }
 0x2f7   : > { %v1970_v36 = vpack.c.bf16 %v3186_v28, %v3182_v56  ;;  %v1900_v5 = vadd.f32 %v3186_v28, %v3184_v18 }
 0x2f8   : > { %3195 = vpow2.f32 %v1797_v22  ;;  %v1801_v7 = vmul.f32 1.442695, %v1703_v9  ;;  %v1803_v29 = vmul.f32 1.442695, %v1704_v13 }
 0x2f9   : > { %3197 = vpow2.f32 %v1799_v0  ;;  %2085 = vmatprep.mubr.bf16.mxu0 %v1970_v36  ;;  %1901 = vadd.xlane.f32.xlu1 %v1900_v5 }
 0x2fa   : > { %v3188_v16 = vpop.eup %3187  ;;  %3199 = vpow2.f32 %v1801_v7 }
 0x2fb   : > { %v3190_v23 = vpop.eup %3189  ;;  %3201 = vpow2.f32 %v1803_v29  ;;  %2086 = vmatmul.mubr.bf16.gmra.mrb[88].mxu0 %v1969_v8  ;;  %v1629_v17 = vpop.xlane.xlu0 %1628 }
 0x2fc   : > { %v3192_v42 = vpop.eup %3191  ;;  %v1705_v27 = vsub.f32 %v3970_v49, %v1629_v17  ;;  %v1706_v15 = vsub.f32 %v3972_v54, %v1629_v17  ;;  %v1903_v43 = vadd.f32 %v3190_v23, %v3188_v16 }
 0x2fd   : > { %v3194_v41 = vpop.eup %3193  ;;  %v1632_v31 = vpop.xlane.xlu1 %1631  ;;  %v1971_v47 = vpack.c.bf16 %v3192_v42, %v3188_v16 }
 0x2fe   : > { %v1805_v39 = vmul.f32 1.442695, %v1705_v27  ;;  %v1807_v30 = vmul.f32 1.442695, %v1706_v15  ;;  %v1707_v21 = vsub.f32 %v3974_v61, %v1632_v31  ;;  %v1708_v20 = vsub.f32 %v3978_v1, %v1632_v31  ;;  %1904 = vadd.xlane.f32.xlu0 %v1903_v43  ;;  %v4287_v15 = vld [vmem:[#allocation2_spill] sm:$0xff] }
 0x2ff   : > { %v1972_v34 = vpack.c.bf16 %v3194_v41, %v3190_v23  ;;  %v1906_v55 = vadd.f32 %v3194_v41, %v3192_v42  ;;  %v4288_v41 = vld [vmem:[#allocation3_spill] sm:$0xff] }
 0x300   : > { %3203 = vpow2.f32 %v1805_v39  ;;  %v1809_v11 = vmul.f32 1.442695, %v1707_v21  ;;  %v1811_v52 = vmul.f32 1.442695, %v1708_v20 }
 0x301   : > { %3205 = vpow2.f32 %v1807_v30  ;;  %2093 = vmatprep.mubr.bf16.mxu0 %v1972_v34  ;;  %1907 = vadd.xlane.f32.xlu1 %v1906_v55  ;;  %v4289_v55 = vld [vmem:[#allocation4_spill] sm:$0xff] }
 0x302   : > { %v3196_v49 = vpop.eup %3195  ;;  %3207 = vpow2.f32 %v1809_v11 }
 0x303   : > { %v3198_v54 = vpop.eup %3197  ;;  %3209 = vpow2.f32 %v1811_v52  ;;  %2094 = vmatmul.mubr.bf16.gmra.mrb[92].mxu0 %v1971_v47  ;;  %v1635_v53 = vpop.xlane.xlu0 %1634  ;;  %v4290_v52 = vld [vmem:[#allocation5_spill] sm:$0xff] }
 0x304   : > { %v3200_v10 = vpop.eup %3199  ;;  %v1709_v61 = vsub.f32 %v3982_v50, %v1635_v53  ;;  %v1710_v1 = vsub.f32 %v3984_v25, %v1635_v53  ;;  %v1909_v48 = vadd.f32 %v3198_v54, %v3196_v49 }
 0x305   : > { %v3202_v57 = vpop.eup %3201  ;;  %v1638_v3 = vpop.xlane.xlu1 %1637  ;;  %v1973_v14 = vpack.c.bf16 %v3200_v10, %v3196_v49 }
 0x306   : > { %v1813_v63 = vmul.f32 1.442695, %v1709_v61  ;;  %v1815_v26 = vmul.f32 1.442695, %v1710_v1  ;;  %v1711_v12 = vsub.f32 %v3986_v32, %v1638_v3  ;;  %v1712_v4 = vsub.f32 %v3990_v33, %v1638_v3  ;;  %1910 = vadd.xlane.f32.xlu0 %v1909_v48 }
 0x307   : > { %v1974_v44 = vpack.c.bf16 %v3202_v57, %v3198_v54  ;;  %v1912_v2 = vadd.f32 %v3202_v57, %v3200_v10  ;;  %v4291_v57 = vld [vmem:[#allocation6_spill] sm:$0xff] }
 0x308   : > { %3211 = vpow2.f32 %v1813_v63  ;;  %v1817_v19 = vmul.f32 1.442695, %v1711_v12  ;;  %v1819_v24 = vmul.f32 1.442695, %v1712_v4 }
 0x309   : > { %3213 = vpow2.f32 %v1815_v26  ;;  %2101 = vmatprep.mubr.bf16.mxu0 %v1974_v44  ;;  %1913 = vadd.xlane.f32.xlu1 %v1912_v2 }
 0x30a   : > { %v3204_v50 = vpop.eup %3203  ;;  %3215 = vpow2.f32 %v1817_v19 }
 0x30b   : > { %v3206_v25 = vpop.eup %3205  ;;  %3217 = vpow2.f32 %v1819_v24  ;;  %2102 = vmatmul.mubr.bf16.gmra.mrb[96].mxu0 %v1973_v14  ;;  %v1641_v56 = vpop.xlane.xlu0 %1640  ;;  %v4292_v14 = vld [vmem:[#allocation7_spill] sm:$0xff] }
 0x30c   : > { %v3208_v51 = vpop.eup %3207  ;;  %v1713_v32 = vsub.f32 %v3994_v35, %v1641_v56  ;;  %v1714_v33 = vsub.f32 %v3996_v37, %v1641_v56  ;;  %v1915_v18 = vadd.f32 %v3206_v25, %v3204_v50 }
 0x30d   : > { %v3210_v58 = vpop.eup %3209  ;;  %v1644_v59 = vpop.xlane.xlu1 %1643  ;;  %v1975_v60 = vpack.c.bf16 %v3208_v51, %v3204_v50 }
 0x30e   : > { %v1821_v28 = vmul.f32 1.442695, %v1713_v32  ;;  %v1823_v45 = vmul.f32 1.442695, %v1714_v33  ;;  %v1715_v8 = vsub.f32 %v3998_v40, %v1644_v59  ;;  %v1716_v22 = vsub.f32 %v4002_v62, %v1644_v59  ;;  %1916 = vadd.xlane.f32.xlu0 %v1915_v18 }
 0x30f   : > { %v1976_v0 = vpack.c.bf16 %v3210_v58, %v3206_v25  ;;  %v1918_v9 = vadd.f32 %v3210_v58, %v3208_v51  ;;  %v4293_v25 = vld [vmem:[#allocation8_spill] sm:$0xff]  ;;  %v4294_v51 = vld [vmem:[#allocation9_spill] sm:$0xff] }
 0x310   : > { %3219 = vpow2.f32 %v1821_v28  ;;  %v1825_v13 = vmul.f32 1.442695, %v1715_v8  ;;  %v1827_v36 = vmul.f32 1.442695, %v1716_v22  ;;  %v4296_v22 = vld [vmem:[#allocation11_spill] sm:$0xff] }
 0x311   : > { %3221 = vpow2.f32 %v1823_v45  ;;  %2109 = vmatprep.mubr.bf16.mxu0 %v1976_v0  ;;  %1919 = vadd.xlane.f32.xlu1 %v1918_v9  ;;  %v4295_v45 = vld [vmem:[#allocation10_spill] sm:$0xff] }
 0x312   : > { %v3212_v35 = vpop.eup %3211  ;;  %3223 = vpow2.f32 %v1825_v13 }
 0x313   : > { %v3214_v37 = vpop.eup %3213  ;;  %3225 = vpow2.f32 %v1827_v36  ;;  %2110 = vmatmul.mubr.bf16.gmra.mrb[100].mxu0 %v1975_v60  ;;  %v1647_v5 = vpop.xlane.xlu0 %1646 }
 0x314   : > { %v3216_v7 = vpop.eup %3215  ;;  %v1717_v40 = vsub.f32 %v4006_v46, %v1647_v5  ;;  %v1718_v62 = vsub.f32 %v4008_v6, %v1647_v5  ;;  %v1921_v29 = vadd.f32 %v3214_v37, %v3212_v35  ;;  %v3130_v5 = vld [vmem:[%s4255_s5 + $0x8] sm:$0xff]  }
 0x315   : > { %v3218_v16 = vpop.eup %3217  ;;  %v1650_v23 = vpop.xlane.xlu1 %1649  ;;  %v1977_v17 = vpack.c.bf16 %v3216_v7, %v3212_v35  ;;  %3044 = vmatprep.subr.bf16.mxu1 %v3130_v5 }
 0x316   : > { %v1829_v42 = vmul.f32 1.442695, %v1717_v40  ;;  %v1831_v27 = vmul.f32 1.442695, %v1718_v62  ;;  %v1719_v43 = vsub.f32 %v4287_v15, %v1650_v23  ;;  %v1720_v31 = vsub.f32 %v4288_v41, %v1650_v23  ;;  %1922 = vadd.xlane.f32.xlu0 %v1921_v29  ;;  %v4297_v29 = vld [vmem:[#allocation12_spill] sm:$0xff]  ;;  %v4298_v23 = vld [vmem:[#allocation13_spill] sm:$0xff]  ;;  %3045 = vmatpush3.bf16.msra.mxu1 %v3130_v5 }
 0x317   : > { %v1978_v47 = vpack.c.bf16 %v3218_v16, %v3214_v37  ;;  %v1924_v39 = vadd.f32 %v3218_v16, %v3216_v7 }
 0x318   : > { %3227 = vpow2.f32 %v1829_v42  ;;  %v1833_v30 = vmul.f32 1.442695, %v1719_v43  ;;  %v1835_v21 = vmul.f32 1.442695, %v1720_v31 }
 0x319   : > { %3229 = vpow2.f32 %v1831_v27  ;;  %2117 = vmatprep.mubr.bf16.mxu0 %v1978_v47  ;;  %1925 = vadd.xlane.f32.xlu1 %v1924_v39  ;;  %v4299_v39 = vld [vmem:[#allocation14_spill] sm:$0xff] }
 0x31a   : > { %v3220_v46 = vpop.eup %3219  ;;  %3231 = vpow2.f32 %v1833_v30 }
 0x31b   : > { %v3222_v6 = vpop.eup %3221  ;;  %3233 = vpow2.f32 %v1835_v21  ;;  %2118 = vmatmul.mubr.bf16.gmra.mrb[104].mxu0 %v1977_v17  ;;  %v1653_v20 = vpop.xlane.xlu0 %1652 }
 0x31c   : > { %v3224_v34 = vpop.eup %3223  ;;  %v1721_v11 = vsub.f32 %v4289_v55, %v1653_v20  ;;  %v1722_v49 = vsub.f32 %v4290_v52, %v1653_v20  ;;  %v1927_v54 = vadd.f32 %v3222_v6, %v3220_v46 }
 0x31d   : > { %v3226_v53 = vpop.eup %3225  ;;  %v1656_v10 = vpop.xlane.xlu1 %1655  ;;  %v1979_v61 = vpack.c.bf16 %v3224_v34, %v3220_v46 }
 0x31e   : > { %v1837_v1 = vmul.f32 1.442695, %v1721_v11  ;;  %v1839_v48 = vmul.f32 1.442695, %v1722_v49  ;;  %v1723_v3 = vsub.f32 %v4291_v57, %v1656_v10  ;;  %v1724_v63 = vsub.f32 %v4292_v14, %v1656_v10  ;;  %1928 = vadd.xlane.f32.xlu0 %v1927_v54 }
 0x31f   : > { %v1980_v26 = vpack.c.bf16 %v3226_v53, %v3222_v6  ;;  %v1930_v12 = vadd.f32 %v3226_v53, %v3224_v34 }
 0x320   : > { %3235 = vpow2.f32 %v1837_v1  ;;  %v1841_v4 = vmul.f32 1.442695, %v1723_v3  ;;  %v1843_v44 = vmul.f32 1.442695, %v1724_v63 }
 0x321   : > { %3237 = vpow2.f32 %v1839_v48  ;;  %2125 = vmatprep.mubr.bf16.mxu0 %v1980_v26  ;;  %1931 = vadd.xlane.f32.xlu1 %v1930_v12 }
 0x322   : > { %v3228_v2 = vpop.eup %3227  ;;  %3239 = vpow2.f32 %v1841_v4 }
 0x323   : > { %v3230_v19 = vpop.eup %3229  ;;  %3241 = vpow2.f32 %v1843_v44  ;;  %2126 = vmatmul.mubr.bf16.gmra.mrb[108].mxu0 %v1979_v61  ;;  %v1659_v24 = vpop.xlane.xlu0 %1658 }
 0x324   : > { %v3232_v50 = vpop.eup %3231  ;;  %v1725_v56 = vsub.f32 %v4293_v25, %v1659_v24  ;;  %v1726_v32 = vsub.f32 %v4294_v51, %v1659_v24  ;;  %v1933_v33 = vadd.f32 %v3230_v19, %v3228_v2 }
 0x325   : > { %v3234_v18 = vpop.eup %3233  ;;  %v1662_v58 = vpop.xlane.xlu1 %1661  ;;  %v1981_v59 = vpack.c.bf16 %v3232_v50, %v3228_v2 }
 0x326   : > { %v1845_v60 = vmul.f32 1.442695, %v1725_v56  ;;  %v1847_v28 = vmul.f32 1.442695, %v1726_v32  ;;  %v1727_v8 = vsub.f32 %v4295_v45, %v1662_v58  ;;  %v1728_v0 = vsub.f32 %v4296_v22, %v1662_v58  ;;  %1934 = vadd.xlane.f32.xlu0 %v1933_v33 }
 0x327   : > { %v1982_v9 = vpack.c.bf16 %v3234_v18, %v3230_v19  ;;  %v1936_v13 = vadd.f32 %v3234_v18, %v3232_v50 }
 0x328   : > { %3243 = vpow2.f32 %v1845_v60  ;;  %v1849_v36 = vmul.f32 1.442695, %v1727_v8  ;;  %v1851_v35 = vmul.f32 1.442695, %v1728_v0 }
 0x329   : > { %3245 = vpow2.f32 %v1847_v28  ;;  %2133 = vmatprep.mubr.bf16.mxu0 %v1982_v9  ;;  %1937 = vadd.xlane.f32.xlu1 %v1936_v13 }
 0x32a   : > { %v3236_v37 = vpop.eup %3235  ;;  %3247 = vpow2.f32 %v1849_v36 }
 0x32b   : > { %v3238_v7 = vpop.eup %3237  ;;  %3249 = vpow2.f32 %v1851_v35  ;;  %2134 = vmatmul.mubr.bf16.gmra.mrb[112].mxu0 %v1981_v59  ;;  %v1665_v40 = vpop.xlane.xlu0 %1664 }
 0x32c   : > { %v3240_v62 = vpop.eup %3239  ;;  %v1729_v16 = vsub.f32 %v4297_v29, %v1665_v40  ;;  %v1730_v17 = vsub.f32 %v4298_v23, %v1665_v40  ;;  %v1939_v42 = vadd.f32 %v3238_v7, %v3236_v37 }
 0x32d   : > { %v3242_v27 = vpop.eup %3241  ;;  %v1668_v15 = vpop.xlane.xlu1 %1667  ;;  %v1983_v43 = vpack.c.bf16 %v3240_v62, %v3236_v37 }
 0x32e   : > { %v1853_v41 = vmul.f32 1.442695, %v1729_v16  ;;  %v1855_v31 = vmul.f32 1.442695, %v1730_v17  ;;  %1940 = vadd.xlane.f32.xlu0 %v1939_v42  ;;  %v1731_v47 = vsub.f32 %v4046_v38, %v1668_v15  ;;  %v1732_v30 = vsub.f32 %v4299_v39, %v1668_v15 }
 0x32f   : > { %v1984_v21 = vpack.c.bf16 %v3242_v27, %v3238_v7  ;;  %v1942_v46 = vadd.f32 %v3242_v27, %v3240_v62 }
 0x330   : > { %3251 = vpow2.f32 %v1853_v41  ;;  %v1857_v6 = vmul.f32 1.442695, %v1731_v47  ;;  %v1859_v20 = vmul.f32 1.442695, %v1732_v30 }
 0x331   : > { %3253 = vpow2.f32 %v1855_v31  ;;  %2141 = vmatprep.mubr.bf16.mxu0 %v1984_v21  ;;  %1943 = vadd.xlane.f32.xlu1 %v1942_v46 }
 0x332   : > { %v3244_v34 = vpop.eup %3243  ;;  %3255 = vpow2.f32 %v1857_v6 }
 0x333   : > { %v3246_v55 = vpop.eup %3245  ;;  %3257 = vpow2.f32 %v1859_v20  ;;  %2142 = vmatmul.mubr.bf16.gmra.mrb[116].mxu0 %v1983_v43 }
 0x334   : > { %v3248_v11 = vpop.eup %3247  ;;  %v1945_v52 = vadd.f32 %v3246_v55, %v3244_v34 }
 0x335   : > { %v3250_v49 = vpop.eup %3249  ;;  %v1985_v54 = vpack.c.bf16 %v3248_v11, %v3244_v34 }
 0x336   : > { %1946 = vadd.xlane.f32.xlu0 %v1945_v52  ;;  %v1986_v38 = vpack.c.bf16 %v3250_v49, %v3246_v55  ;;  %v1948_v53 = vadd.f32 %v3250_v49, %v3248_v11 }
 0x338   : > { %2149 = vmatprep.mubr.bf16.mxu0 %v1986_v38  ;;  %1949 = vadd.xlane.f32.xlu1 %v1948_v53 }
 0x33a   : > { %v3252_v10 = vpop.eup %3251 }
 0x33b   : > { %v3254_v61 = vpop.eup %3253  ;;  %2150 = vmatmul.mubr.bf16.gmra.mrb[120].mxu0 %v1985_v54 }
 0x33c   : > { %v3256_v1 = vpop.eup %3255  ;;  %v1951_v48 = vadd.f32 %v3254_v61, %v3252_v10 }
 0x33d   : > { %v3258_v57 = vpop.eup %3257  ;;  %v1987_v3 = vpack.c.bf16 %v3256_v1, %v3252_v10 }
 0x33e   : > { %1952 = vadd.xlane.f32.xlu0 %v1951_v48  ;;  %v1988_v14 = vpack.c.bf16 %v3258_v57, %v3254_v61  ;;  %v1954_v63 = vadd.f32 %v3258_v57, %v3256_v1 }
 0x340   : > { %2157 = vmatprep.mubr.bf16.mxu0 %v1988_v14  ;;  %1955 = vadd.xlane.f32.xlu1 %v1954_v63 }
 0x343   : > { %2158 = vmatmul.mubr.bf16.gmra.mrb[124].mxu0 %v1987_v3 }
 0x353   : > { %v1863_v26 = vpop.xlane.xlu0 %1862 }
 0x354   : > { %3259 = vrcp.f32 %v1863_v26 }
 0x358   : > { %v1866_v12 = vpop.xlane.xlu1 %1865 }
 0x359   : > { %3261 = vrcp.f32 %v1866_v12 }
 0x35b   : > { %v1869_v4 = vpop.xlane.xlu0 %1868 }
 0x35c   : > { %3263 = vrcp.f32 %v1869_v4 }
 0x35e   : > { %v3260_v56 = vpop.eup %3259 }
 0x360   : > { %v1872_v44 = vpop.xlane.xlu1 %1871 }
 0x361   : > { %3265 = vrcp.f32 %v1872_v44 }
 0x363   : > { %v3262_v32 = vpop.eup %3261  ;;  %v1875_v58 = vpop.xlane.xlu0 %1874 }
 0x364   : > { %3267 = vrcp.f32 %v1875_v58 }
 0x366   : > { %v1878_v59 = vpop.xlane.xlu1 %1877  ;;  %v3264_v9 = vpop.eup %3263 }
 0x367   : > { %3269 = vrcp.f32 %v1878_v59 }
 0x36b   : > { %v3266_v36 = vpop.eup %3265  ;;  %v1881_v5 = vpop.xlane.xlu0 %1880 }
 0x36c   : > { %3271 = vrcp.f32 %v1881_v5 }
 0x36e   : > { %v1884_v7 = vpop.xlane.xlu1 %1883  ;;  %v3268_v42 = vpop.eup %3267 }
 0x36f   : > { %3273 = vrcp.f32 %v1884_v7 }
 0x371   : > { %v3270_v15 = vpop.eup %3269 }
 0x373   : > { %v1887_v31 = vpop.xlane.xlu0 %1886 }
 0x374   : > { %3275 = vrcp.f32 %v1887_v31 }
 0x376   : > { %v1890_v47 = vpop.xlane.xlu1 %1889  ;;  %v3272_v34 = vpop.eup %3271 }
 0x377   : > { %3277 = vrcp.f32 %v1890_v47 }
 0x379   : > { %v3274_v11 = vpop.eup %3273 }
 0x37b   : > { %v1893_v54 = vpop.xlane.xlu0 %1892 }
 0x37c   : > { %3279 = vrcp.f32 %v1893_v54 }
 0x37e   : > { %v1896_v38 = vpop.xlane.xlu1 %1895  ;;  %v3276_v3 = vpop.eup %3275 }
 0x37f   : > { %3281 = vrcp.f32 %v1896_v38 }
 0x381   : > { %v3278_v63 = vpop.eup %3277 }
 0x383   : > { %v1899_v4 = vpop.xlane.xlu0 %1898 }
 0x384   : > { %3283 = vrcp.f32 %v1899_v4 }
 0x386   : > { %v1902_v44 = vpop.xlane.xlu1 %1901 }
 0x387   : > { %3285 = vrcp.f32 %v1902_v44 }
 0x38b   : > { %v1905_v59 = vpop.xlane.xlu0 %1904 }
 0x38c   : > { %3287 = vrcp.f32 %v1905_v59 }
 0x393   : > { %v1911_v7 = vpop.xlane.xlu0 %1910 }
 0x39b   : > { %v1917_v47 = vpop.xlane.xlu0 %1916 }
 0x39e   : > { %v2826_v2 = vpop.f32.mrb[64].mxu0 }
 0x39f   : > { %v2827_v19 = vpop.f32.mrb[65].mxu0 }
 0x3a0   : > { %v2828_v24 = vadd.f32 %v2827_v19, %v2826_v2  ;;  %v2829_v50 = vpop.f32.mrb[66].mxu0 }
 0x3a1   : > { %v2830_v25 = vpop.f32.mrb[67].mxu0 }
 0x3a2   : > { %v2831_v51 = vadd.f32 %v2830_v25, %v2829_v50  ;;  %v2198_v33 = vmul.f32 %v3260_v56, %v2828_v24 }
 0x3a3   : > { %v1923_v38 = vpop.xlane.xlu0 %1922 }
 0x3a4   : > { %v2199_v18 = vmul.f32 %v3262_v32, %v2831_v51  ;;  %v3280_v51 = vpop.eup %3279 }
 0x3a6   : > { %v2230_v60 = vpack.c.bf16 %v2199_v18, %v2198_v33  ;;  %v2832_v28 = vpop.f32.mrb[68].mxu0  ;;  %v3282_v33 = vpop.eup %3281 }
 0x3a7   : > { %v2833_v45 = vpop.f32.mrb[69].mxu0 }
 0x3a8   : > { %v2834_v8 = vadd.f32 %v2833_v45, %v2832_v28  ;;  %v2835_v22 = vpop.f32.mrb[70].mxu0  ;;  %3046 = vmatprep.mubr.msk.bf16.mxu1 %vm1283_vm2, %v2230_v60  ;;  %v1908_v60 = vpop.xlane.xlu1 %1907 }
 0x3a9   : > { %v2836_v0 = vpop.f32.mrb[71].mxu0  ;;  %3289 = vrcp.f32 %v1908_v60 }
 0x3aa   : > { %v2837_v13 = vadd.f32 %v2836_v0, %v2835_v22  ;;  %v2200_v35 = vmul.f32 %v3264_v9, %v2834_v8  ;;  %3291 = vrcp.f32 %v1911_v7 }
 0x3ab   : > { %v1929_v44 = vpop.xlane.xlu0 %1928 }
 0x3ac   : > { %v2201_v37 = vmul.f32 %v3266_v36, %v2837_v13  ;;  %v3284_v13 = vpop.eup %3283 }
 0x3ae   : > { %v2231_v40 = vpack.c.bf16 %v2201_v37, %v2200_v35  ;;  %v2838_v62 = vpop.f32.mrb[72].mxu0  ;;  %v3286_v35 = vpop.eup %3285 }
 0x3af   : > { %v2839_v29 = vpop.f32.mrb[73].mxu0 }
 0x3b0   : > { %v2840_v16 = vadd.f32 %v2839_v29, %v2838_v62  ;;  %v2841_v23 = vpop.f32.mrb[74].mxu0  ;;  %3047 = vmatmul.mubr.msk.bf16.vlgmr.msra.gmra.mrb[96].mxu1 %vm1283_vm2, %v2231_v40  ;;  %v1914_v40 = vpop.xlane.xlu1 %1913 }
 0x3b1   : > { %v2842_v17 = vpop.f32.mrb[75].mxu0  ;;  %3293 = vrcp.f32 %v1914_v40 }
 0x3b2   : > { %v2843_v27 = vadd.f32 %v2842_v17, %v2841_v23  ;;  %v2202_v43 = vmul.f32 %v3268_v42, %v2840_v16  ;;  %3295 = vrcp.f32 %v1917_v47 }
 0x3b3   : > { %v1935_v60 = vpop.xlane.xlu0 %1934 }
 0x3b4   : > { %v2203_v41 = vmul.f32 %v3270_v15, %v2843_v27  ;;  %v3288_v27 = vpop.eup %3287 }
 0x3b6   : > { %v2232_v39 = vpack.c.bf16 %v2203_v41, %v2202_v43  ;;  %v2844_v30 = vpop.f32.mrb[76].mxu0  ;;  %v3290_v43 = vpop.eup %3289 }
 0x3b7   : > { %v2845_v21 = vpop.f32.mrb[77].mxu0 }
 0x3b8   : > { %v2846_v46 = vadd.f32 %v2845_v21, %v2844_v30  ;;  %v2847_v6 = vpop.f32.mrb[78].mxu0  ;;  %3050 = vmatprep.mubr.msk.bf16.mxu1 %vm1283_vm2, %v2232_v39  ;;  %v1920_v39 = vpop.xlane.xlu1 %1919 }
 0x3b9   : > { %v2848_v20 = vpop.f32.mrb[79].mxu0  ;;  %3297 = vrcp.f32 %v1920_v39 }
 0x3ba   : > { %v2849_v55 = vadd.f32 %v2848_v20, %v2847_v6  ;;  %v2204_v52 = vmul.f32 %v3272_v34, %v2846_v46  ;;  %3299 = vrcp.f32 %v1923_v38 }
 0x3bb   : > { %v1941_v40 = vpop.xlane.xlu0 %1940 }
 0x3bc   : > { %v2205_v49 = vmul.f32 %v3274_v11, %v2849_v55  ;;  %v3292_v55 = vpop.eup %3291 }
 0x3be   : > { %v2233_v53 = vpack.c.bf16 %v2205_v49, %v2204_v52  ;;  %v2850_v10 = vpop.f32.mrb[80].mxu0  ;;  %v3294_v52 = vpop.eup %3293 }
 0x3bf   : > { %v2851_v61 = vpop.f32.mrb[81].mxu0 }
 0x3c0   : > { %v2852_v1 = vadd.f32 %v2851_v61, %v2850_v10  ;;  %v2853_v48 = vpop.f32.mrb[82].mxu0  ;;  %3051 = vmatmul.mubr.msk.bf16.gmra.mrb[100].mxu1 %vm1283_vm2, %v2233_v53  ;;  %v1926_v53 = vpop.xlane.xlu1 %1925 }
 0x3c1   : > { %v2854_v57 = vpop.f32.mrb[83].mxu0  ;;  %3301 = vrcp.f32 %v1926_v53 }
 0x3c2   : > { %v2855_v14 = vadd.f32 %v2854_v57, %v2853_v48  ;;  %v2206_v26 = vmul.f32 %v3276_v3, %v2852_v1  ;;  %3303 = vrcp.f32 %v1929_v44 }
 0x3c3   : > { %v1947_v39 = vpop.xlane.xlu0 %1946 }
 0x3c4   : > { %v2207_v12 = vmul.f32 %v3278_v63, %v2855_v14  ;;  %v3296_v14 = vpop.eup %3295 }
 0x3c6   : > { %v2234_v2 = vpack.c.bf16 %v2207_v12, %v2206_v26  ;;  %v2856_v19 = vpop.f32.mrb[84].mxu0  ;;  %v3298_v26 = vpop.eup %3297 }
 0x3c7   : > { %v2857_v24 = vpop.f32.mrb[85].mxu0 }
 0x3c8   : > { %v2858_v50 = vadd.f32 %v2857_v24, %v2856_v19  ;;  %v2859_v25 = vpop.f32.mrb[86].mxu0  ;;  %3054 = vmatprep.mubr.msk.bf16.mxu1 %vm1283_vm2, %v2234_v2  ;;  %v1932_v2 = vpop.xlane.xlu1 %1931 }
 0x3c9   : > { %v2860_v56 = vpop.f32.mrb[87].mxu0  ;;  %3305 = vrcp.f32 %v1932_v2 }
 0x3ca   : > { %v2861_v32 = vadd.f32 %v2860_v56, %v2859_v25  ;;  %v2208_v18 = vmul.f32 %v3280_v51, %v2858_v50  ;;  %3307 = vrcp.f32 %v1935_v60  ;;  %v4144_v60 = vld [vmem:[%s4259_s9] ss:$0 sm:$0xff] }
 0x3cb   : > { %v1953_v53 = vpop.xlane.xlu0 %1952 }
 0x3cc   : > { %v2209_v58 = vmul.f32 %v3282_v33, %v2861_v32  ;;  %v3300_v32 = vpop.eup %3299 }
 0x3ce   : > { %v2235_v28 = vpack.c.bf16 %v2209_v58, %v2208_v18  ;;  %v2862_v45 = vpop.f32.mrb[88].mxu0  ;;  %v3302_v18 = vpop.eup %3301 }
 0x3cf   : > { %v2863_v8 = vpop.f32.mrb[89].mxu0 }
 0x3d0   : > { %v2864_v22 = vadd.f32 %v2863_v8, %v2862_v45  ;;  %v2865_v0 = vpop.f32.mrb[90].mxu0  ;;  %3055 = vmatmul.mubr.msk.bf16.gmra.mrb[104].mxu1 %vm1283_vm2, %v2235_v28  ;;  %v1938_v28 = vpop.xlane.xlu1 %1937 }
 0x3d1   : > { %v2866_v9 = vpop.f32.mrb[91].mxu0  ;;  %3309 = vrcp.f32 %v1938_v28 }
 0x3d2   : > { %v2867_v36 = vadd.f32 %v2866_v9, %v2865_v0  ;;  %v2210_v37 = vmul.f32 %v3284_v13, %v2864_v22  ;;  %3311 = vrcp.f32 %v1941_v40 }
 0x3d4   : > { %v2211_v5 = vmul.f32 %v3286_v35, %v2867_v36  ;;  %v3304_v36 = vpop.eup %3303 }
 0x3d6   : > { %v2236_v62 = vpack.c.bf16 %v2211_v5, %v2210_v37  ;;  %v2868_v29 = vpop.f32.mrb[92].mxu0  ;;  %v3306_v37 = vpop.eup %3305 }
 0x3d7   : > { %v2869_v16 = vpop.f32.mrb[93].mxu0 }
 0x3d8   : > { %v2870_v23 = vadd.f32 %v2869_v16, %v2868_v29  ;;  %v2871_v17 = vpop.f32.mrb[94].mxu0  ;;  %3058 = vmatprep.mubr.msk.bf16.mxu1 %vm1283_vm2, %v2236_v62  ;;  %v1944_v62 = vpop.xlane.xlu1 %1943 }
 0x3d9   : > { %v2872_v42 = vpop.f32.mrb[95].mxu0  ;;  %3313 = vrcp.f32 %v1944_v62 }
 0x3da   : > { %v2873_v15 = vadd.f32 %v2872_v42, %v2871_v17  ;;  %v2212_v41 = vmul.f32 %v3288_v27, %v2870_v23  ;;  %3315 = vrcp.f32 %v1947_v39 }
 0x3dc   : > { %v2213_v31 = vmul.f32 %v3290_v43, %v2873_v15  ;;  %v3308_v15 = vpop.eup %3307 }
 0x3de   : > { %v2237_v30 = vpack.c.bf16 %v2213_v31, %v2212_v41  ;;  %v2874_v21 = vpop.f32.mrb[96].mxu0  ;;  %v3310_v41 = vpop.eup %3309 }
 0x3df   : > { %v2875_v46 = vpop.f32.mrb[97].mxu0 }
 0x3e0   : > { %v2876_v6 = vadd.f32 %v2875_v46, %v2874_v21  ;;  %v2877_v20 = vpop.f32.mrb[98].mxu0  ;;  %3059 = vmatmul.mubr.msk.bf16.gmra.mrb[108].mxu1 %vm1283_vm2, %v2237_v30  ;;  %v1950_v30 = vpop.xlane.xlu1 %1949 }
 0x3e1   : > { %v2878_v34 = vpop.f32.mrb[99].mxu0  ;;  %3317 = vrcp.f32 %v1950_v30 }
 0x3e2   : > { %v2879_v11 = vadd.f32 %v2878_v34, %v2877_v20  ;;  %v2214_v49 = vmul.f32 %v3292_v55, %v2876_v6  ;;  %3319 = vrcp.f32 %v1953_v53 }
 0x3e4   : > { %v2215_v54 = vmul.f32 %v3294_v52, %v2879_v11  ;;  %v3312_v11 = vpop.eup %3311 }
 0x3e6   : > { %v2238_v10 = vpack.c.bf16 %v2215_v54, %v2214_v49  ;;  %v2880_v61 = vpop.f32.mrb[100].mxu0  ;;  %v3314_v49 = vpop.eup %3313 }
 0x3e7   : > { %v2881_v1 = vpop.f32.mrb[101].mxu0 }
 0x3e8   : > { %v2882_v48 = vadd.f32 %v2881_v1, %v2880_v61  ;;  %v2883_v57 = vpop.f32.mrb[102].mxu0  ;;  %3062 = vmatprep.mubr.msk.bf16.mxu1 %vm1283_vm2, %v2238_v10  ;;  %v1956_v10 = vpop.xlane.xlu1 %1955 }
 0x3e9   : > { %v2884_v3 = vpop.f32.mrb[103].mxu0  ;;  %3321 = vrcp.f32 %v1956_v10 }
 0x3ea   : > { %v2885_v63 = vadd.f32 %v2884_v3, %v2883_v57  ;;  %v2216_v12 = vmul.f32 %v3296_v14, %v2882_v48 }
 0x3ec   : > { %v2217_v4 = vmul.f32 %v3298_v26, %v2885_v63  ;;  %v3316_v63 = vpop.eup %3315 }
 0x3ee   : > { %v2239_v19 = vpack.c.bf16 %v2217_v4, %v2216_v12  ;;  %v2886_v24 = vpop.f32.mrb[104].mxu0  ;;  %v3318_v12 = vpop.eup %3317 }
 0x3ef   : > { %v2887_v50 = vpop.f32.mrb[105].mxu0 }
 0x3f0   : > { %v2888_v25 = vadd.f32 %v2887_v50, %v2886_v24  ;;  %v2889_v56 = vpop.f32.mrb[106].mxu0  ;;  %3063 = vmatmul.mubr.msk.bf16.gmra.mrb[112].mxu1 %vm1283_vm2, %v2239_v19 }
 0x3f1   : > { %v2890_v51 = vpop.f32.mrb[107].mxu0 }
 0x3f2   : > { %v2891_v33 = vadd.f32 %v2890_v51, %v2889_v56  ;;  %v2218_v58 = vmul.f32 %v3300_v32, %v2888_v25  ;;  %v3320_v51 = vpop.eup %3319 }
 0x3f4   : > { %v2219_v59 = vmul.f32 %v3302_v18, %v2891_v33  ;;  %v3322_v33 = vpop.eup %3321 }
 0x3f6   : > { %v2240_v45 = vpack.c.bf16 %v2219_v59, %v2218_v58  ;;  %v2892_v8 = vpop.f32.mrb[108].mxu0 }
 0x3f7   : > { %v2893_v22 = vpop.f32.mrb[109].mxu0 }
 0x3f8   : > { %v2894_v0 = vadd.f32 %v2893_v22, %v2892_v8  ;;  %v2895_v9 = vpop.f32.mrb[110].mxu0  ;;  %3066 = vmatprep.mubr.msk.bf16.mxu1 %vm1283_vm2, %v2240_v45 }
 0x3f9   : > { %v2896_v13 = vpop.f32.mrb[111].mxu0 }
 0x3fa   : > { %v2897_v35 = vadd.f32 %v2896_v13, %v2895_v9  ;;  %v2220_v5 = vmul.f32 %v3304_v36, %v2894_v0 }
 0x3fc   : > { %v2221_v7 = vmul.f32 %v3306_v37, %v2897_v35 }
 0x3fe   : > { %v2241_v29 = vpack.c.bf16 %v2221_v7, %v2220_v5  ;;  %v2898_v16 = vpop.f32.mrb[112].mxu0 }
 0x3ff   : > { %v2899_v23 = vpop.f32.mrb[113].mxu0 }
 0x400   : > { %v2900_v17 = vadd.f32 %v2899_v23, %v2898_v16  ;;  %v2901_v42 = vpop.f32.mrb[114].mxu0  ;;  %3067 = vmatmul.mubr.msk.bf16.gmra.mrb[116].mxu1 %vm1283_vm2, %v2241_v29 }
 0x401   : > { %v2902_v27 = vpop.f32.mrb[115].mxu0 }
 0x402   : > { %v2903_v43 = vadd.f32 %v2902_v27, %v2901_v42  ;;  %v2222_v31 = vmul.f32 %v3308_v15, %v2900_v17 }
 0x404   : > { %v2223_v47 = vmul.f32 %v3310_v41, %v2903_v43 }
 0x406   : > { %v2242_v21 = vpack.c.bf16 %v2223_v47, %v2222_v31  ;;  %v2904_v46 = vpop.f32.mrb[116].mxu0 }
 0x407   : > { %v2905_v6 = vpop.f32.mrb[117].mxu0 }
 0x408   : > { %v2906_v20 = vadd.f32 %v2905_v6, %v2904_v46  ;;  %v2907_v34 = vpop.f32.mrb[118].mxu0  ;;  %3070 = vmatprep.mubr.msk.bf16.mxu1 %vm1283_vm2, %v2242_v21 }
 0x409   : > { %v2908_v55 = vpop.f32.mrb[119].mxu0 }
 0x40a   : > { %v2909_v52 = vadd.f32 %v2908_v55, %v2907_v34  ;;  %v2224_v54 = vmul.f32 %v3312_v11, %v2906_v20 }
 0x40c   : > { %v2225_v38 = vmul.f32 %v3314_v49, %v2909_v52 }
 0x40e   : > { %v2243_v61 = vpack.c.bf16 %v2225_v38, %v2224_v54  ;;  %v2910_v1 = vpop.f32.mrb[120].mxu0 }
 0x40f   : > { %v2911_v48 = vpop.f32.mrb[121].mxu0 }
 0x410   : > { %v2912_v57 = vadd.f32 %v2911_v48, %v2910_v1  ;;  %v2913_v3 = vpop.f32.mrb[122].mxu0  ;;  %3071 = vmatmul.mubr.msk.bf16.gmra.mrb[120].mxu1 %vm1283_vm2, %v2243_v61 }
 0x411   : > { %v2914_v14 = vpop.f32.mrb[123].mxu0 }
 0x412   : > { %v2915_v26 = vadd.f32 %v2914_v14, %v2913_v3  ;;  %v2226_v4 = vmul.f32 %v3316_v63, %v2912_v57 }
 0x414   : > { %v2227_v44 = vmul.f32 %v3318_v12, %v2915_v26 }
 0x416   : > { %v2244_v2 = vpack.c.bf16 %v2227_v44, %v2226_v4  ;;  %v2916_v19 = vpop.f32.mrb[124].mxu0 }
 0x417   : > { %v2917_v24 = vpop.f32.mrb[125].mxu0 }
 0x418   : > { %v2918_v50 = vadd.f32 %v2917_v24, %v2916_v19  ;;  %v2919_v25 = vpop.f32.mrb[126].mxu0  ;;  %3074 = vmatprep.mubr.msk.bf16.mxu1 %vm1283_vm2, %v2244_v2 }
 0x419   : > { %v2920_v56 = vpop.f32.mrb[127].mxu0 }
 0x41a   : > { %v2921_v32 = vadd.f32 %v2920_v56, %v2919_v25  ;;  %v2228_v18 = vmul.f32 %v3320_v51, %v2918_v50 }
 0x41c   : > { %v2229_v58 = vmul.f32 %v3322_v33, %v2921_v32 }
 0x41e   : > { %v2245_v59 = vpack.c.bf16 %v2229_v58, %v2228_v18 }
 0x420   : > { %3075 = vmatmul.mubr.msk.bf16.gmra.mrb[124].mxu1 %vm1283_vm2, %v2245_v59 }
 0x483   : > { %v3048_v28 = vpop.f32.mrb[96].mxu1 }
 0x484   : > { %v2360_v45 = vadd.f32 %v3048_v28, %v4144_v60  ;;  %v2351_v8 = vpop.f32.mrb[97].mxu1 }
 0x485   : > { %v2352_v22 = vadd.f32 %v4144_v60, %v2351_v8  ;;  %v3049_v0 = vpop.f32.mrb[98].mxu1 }
 0x486   : > { %2480 = vst.msk [vmem:[%s4149_s25 + $0x10] sm:$0xff] %vm533_vm1, %v2360_v45  ;;  %v2363_v9 = vadd.f32 %v3049_v0, %v4144_v60  ;;  %v2354_v13 = vpop.f32.mrb[99].mxu1 }
 0x487   : > { %2478 = vst.msk [vmem:[%s4149_s25] sm:$0xff] %vm533_vm1, %v2352_v22  ;;  %v2355_v36 = vadd.f32 %v4144_v60, %v2354_v13 }
 0x488   : > { %2481 = vst.msk [vmem:[%s4149_s25 + $0x18] sm:$0xff] %vm533_vm1, %v2363_v9 }
 0x489   : > { %2479 = vst.msk [vmem:[%s4149_s25 + $0x8] sm:$0xff] %vm533_vm1, %v2355_v36 }
 0x493   : > { %v3052_v35 = vpop.f32.mrb[100].mxu1 }
 0x494   : > { %v2376_v37 = vadd.f32 %v3052_v35, %v4144_v60  ;;  %v2367_v5 = vpop.f32.mrb[101].mxu1 }
 0x495   : > { %v2368_v7 = vadd.f32 %v4144_v60, %v2367_v5  ;;  %v3053_v40 = vpop.f32.mrb[102].mxu1 }
 0x496   : > { %2484 = vst.msk [vmem:[%s4149_s25 + $0x30] sm:$0xff] %vm533_vm1, %v2376_v37  ;;  %v2379_v62 = vadd.f32 %v3053_v40, %v4144_v60  ;;  %v2370_v29 = vpop.f32.mrb[103].mxu1 }
 0x497   : > { %2482 = vst.msk [vmem:[%s4149_s25 + $0x20] sm:$0xff] %vm533_vm1, %v2368_v7  ;;  %v2371_v16 = vadd.f32 %v4144_v60, %v2370_v29 }
 0x498   : > { %2485 = vst.msk [vmem:[%s4149_s25 + $0x38] sm:$0xff] %vm533_vm1, %v2379_v62 }
 0x499   : > { %2483 = vst.msk [vmem:[%s4149_s25 + $0x28] sm:$0xff] %vm533_vm1, %v2371_v16 }
 0x4a3   : > { %v3056_v23 = vpop.f32.mrb[104].mxu1 }
 0x4a4   : > { %v2392_v17 = vadd.f32 %v3056_v23, %v4144_v60  ;;  %v2383_v42 = vpop.f32.mrb[105].mxu1 }
 0x4a5   : > { %v2384_v27 = vadd.f32 %v4144_v60, %v2383_v42  ;;  %v3057_v15 = vpop.f32.mrb[106].mxu1 }
 0x4a6   : > { %2488 = vst.msk [vmem:[%s4149_s25 + $0x50] sm:$0xff] %vm533_vm1, %v2392_v17  ;;  %v2395_v43 = vadd.f32 %v3057_v15, %v4144_v60  ;;  %v2386_v41 = vpop.f32.mrb[107].mxu1 }
 0x4a7   : > { %2486 = vst.msk [vmem:[%s4149_s25 + $0x40] sm:$0xff] %vm533_vm1, %v2384_v27  ;;  %v2387_v31 = vadd.f32 %v4144_v60, %v2386_v41 }
 0x4a8   : > { %2489 = vst.msk [vmem:[%s4149_s25 + $0x58] sm:$0xff] %vm533_vm1, %v2395_v43 }
 0x4a9   : > { %2487 = vst.msk [vmem:[%s4149_s25 + $0x48] sm:$0xff] %vm533_vm1, %v2387_v31 }
 0x4b3   : > { %v3060_v47 = vpop.f32.mrb[108].mxu1 }
 0x4b4   : > { %v2408_v39 = vadd.f32 %v3060_v47, %v4144_v60  ;;  %v2399_v30 = vpop.f32.mrb[109].mxu1 }
 0x4b5   : > { %v2400_v21 = vadd.f32 %v4144_v60, %v2399_v30  ;;  %v3061_v46 = vpop.f32.mrb[110].mxu1 }
 0x4b6   : > { %2492 = vst.msk [vmem:[%s4149_s25 + $0x70] sm:$0xff] %vm533_vm1, %v2408_v39  ;;  %v2411_v6 = vadd.f32 %v3061_v46, %v4144_v60  ;;  %v2402_v20 = vpop.f32.mrb[111].mxu1 }
 0x4b7   : > { %2490 = vst.msk [vmem:[%s4149_s25 + $0x60] sm:$0xff] %vm533_vm1, %v2400_v21  ;;  %v2403_v34 = vadd.f32 %v4144_v60, %v2402_v20 }
 0x4b8   : > { %2493 = vst.msk [vmem:[%s4149_s25 + $0x78] sm:$0xff] %vm533_vm1, %v2411_v6 }
 0x4b9   : > { %2491 = vst.msk [vmem:[%s4149_s25 + $0x68] sm:$0xff] %vm533_vm1, %v2403_v34 }
 0x4c3   : > { %v3064_v55 = vpop.f32.mrb[112].mxu1 }
 0x4c4   : > { %v2424_v11 = vadd.f32 %v3064_v55, %v4144_v60  ;;  %v2415_v52 = vpop.f32.mrb[113].mxu1 }
 0x4c5   : > { %v2416_v49 = vadd.f32 %v4144_v60, %v2415_v52  ;;  %v3065_v54 = vpop.f32.mrb[114].mxu1 }
 0x4c6   : > { %2496 = vst.msk [vmem:[%s4149_s25 + $0x90] sm:$0xff] %vm533_vm1, %v2424_v11  ;;  %v2427_v38 = vadd.f32 %v3065_v54, %v4144_v60  ;;  %v2418_v53 = vpop.f32.mrb[115].mxu1 }
 0x4c7   : > { %2494 = vst.msk [vmem:[%s4149_s25 + $0x80] sm:$0xff] %vm533_vm1, %v2416_v49  ;;  %v2419_v10 = vadd.f32 %v4144_v60, %v2418_v53 }
 0x4c8   : > { %2497 = vst.msk [vmem:[%s4149_s25 + $0x98] sm:$0xff] %vm533_vm1, %v2427_v38 }
 0x4c9   : > { %2495 = vst.msk [vmem:[%s4149_s25 + $0x88] sm:$0xff] %vm533_vm1, %v2419_v10 }
 0x4d3   : > { %v3068_v61 = vpop.f32.mrb[116].mxu1 }
 0x4d4   : > { %v2440_v1 = vadd.f32 %v3068_v61, %v4144_v60  ;;  %v2431_v48 = vpop.f32.mrb[117].mxu1 }
 0x4d5   : > { %v2432_v57 = vadd.f32 %v4144_v60, %v2431_v48  ;;  %v3069_v3 = vpop.f32.mrb[118].mxu1 }
 0x4d6   : > { %2500 = vst.msk [vmem:[%s4149_s25 + $0xb0] sm:$0xff] %vm533_vm1, %v2440_v1  ;;  %v2443_v14 = vadd.f32 %v3069_v3, %v4144_v60  ;;  %v2434_v63 = vpop.f32.mrb[119].mxu1 }
 0x4d7   : > { %2498 = vst.msk [vmem:[%s4149_s25 + $0xa0] sm:$0xff] %vm533_vm1, %v2432_v57  ;;  %v2435_v26 = vadd.f32 %v4144_v60, %v2434_v63 }
 0x4d8   : > { %2501 = vst.msk [vmem:[%s4149_s25 + $0xb8] sm:$0xff] %vm533_vm1, %v2443_v14 }
 0x4d9   : > { %2499 = vst.msk [vmem:[%s4149_s25 + $0xa8] sm:$0xff] %vm533_vm1, %v2435_v26 }
 0x4e3   : > { %v3072_v12 = vpop.f32.mrb[120].mxu1 }
 0x4e4   : > { %v2456_v4 = vadd.f32 %v3072_v12, %v4144_v60  ;;  %v2447_v44 = vpop.f32.mrb[121].mxu1 }
 0x4e5   : > { %v2448_v2 = vadd.f32 %v4144_v60, %v2447_v44  ;;  %v3073_v19 = vpop.f32.mrb[122].mxu1 }
 0x4e6   : > { %2504 = vst.msk [vmem:[%s4149_s25 + $0xd0] sm:$0xff] %vm533_vm1, %v2456_v4  ;;  %v2459_v24 = vadd.f32 %v3073_v19, %v4144_v60  ;;  %v2450_v50 = vpop.f32.mrb[123].mxu1 }
 0x4e7   : > { %2502 = vst.msk [vmem:[%s4149_s25 + $0xc0] sm:$0xff] %vm533_vm1, %v2448_v2  ;;  %v2451_v25 = vadd.f32 %v4144_v60, %v2450_v50 }
 0x4e8   : > { %2505 = vst.msk [vmem:[%s4149_s25 + $0xd8] sm:$0xff] %vm533_vm1, %v2459_v24 }
 0x4e9   : > { %2503 = vst.msk [vmem:[%s4149_s25 + $0xc8] sm:$0xff] %vm533_vm1, %v2451_v25 }
 0x4f3   : > { %v3076_v56 = vpop.f32.mrb[124].mxu1 }
 0x4f4   : > { %v2472_v51 = vadd.f32 %v3076_v56, %v4144_v60  ;;  %v2463_v32 = vpop.f32.mrb[125].mxu1 }
 0x4f5   : > { %v2464_v33 = vadd.f32 %v4144_v60, %v2463_v32  ;;  %v3077_v18 = vpop.f32.mrb[126].mxu1 }
 0x4f6   : > { %2508 = vst.msk [vmem:[%s4149_s25 + $0xf0] sm:$0xff] %vm533_vm1, %v2472_v51  ;;  %v2475_v58 = vadd.f32 %v3077_v18, %v4144_v60  ;;  %v2466_v59 = vpop.f32.mrb[127].mxu1 }
 0x4f7   : > { %2506 = vst.msk [vmem:[%s4149_s25 + $0xe0] sm:$0xff] %vm533_vm1, %v2464_v33  ;;  %v2467_v28 = vadd.f32 %v4144_v60, %v2466_v59 }
 0x4f8   : > { %2509 = vst.msk [vmem:[%s4149_s25 + $0xf8] sm:$0xff] %vm533_vm1, %v2475_v58 }
 0x4f9   : > { %2507 = vst.msk [vmem:[%s4149_s25 + $0xe8] sm:$0xff] %vm533_vm1, %v2467_v28 }
 0x4fa PF: > { %s20_s13 = sadd.s32 1, %s3329_s13  }
 0x4fb   : > { %p17_p4 = scmp.ge.s32.totalorder %s20_s13, 4  }
 0x4fd   :  { %19 = sbr.rel (!%p17_p4) target bundleno = 1 (0x1), region = 93 }

</bundles_post_ra>
